<compile_context>
chip_gen: v6e
topology: v6e:2x2x1
jax: 0.10.0
libtpu: 0.0.40
codegen_flags: <defaults>
</compile_context>

<pallas_src>
import functools

import jax
import jax.numpy as jnp
from jax.experimental import pallas as pl
from jax.experimental.pallas import tpu as pltpu

NEG_SLOPE = 0.01  # torch.nn.LeakyReLU() default negative_slope


# ------------------------------ Pallas kernel -------------------------------

def _fused_cnn_kernel(*refs, H, W, ch_out, n_layers, neg_slope):
    """Whole simple_CNN forward in one kernel invocation (no grid).

    refs = (x, w0, b0, ..., w_{L-1}, b_{L-1}, out, halo_scratch)
      x            : (C_pad, N*H*W)      channel-major, lane-dense activations
      w_l          : (Cout_l, 9*Cin_l)   im2col-flattened 3x3 weights
      b_l          : (Cout_l, 1)
      out          : (ch_out, N*H*W)
      halo_scratch : (C_scr, N*H*W + 2*(W+1)) f32 VMEM scratch
    """
    x_ref = refs[0]
    o_ref = refs[-2]
    buf_ref = refs[-1]
    w_refs = refs[1:1 + 2 * n_layers:2]
    b_refs = refs[2:1 + 2 * n_layers:2]

    L = x_ref.shape[-1]          # N * H * W (lane axis)
    pad = W + 1                  # flat-row-major halo width of a 3x3 conv

    # Zero the halo scratch once; per-layer stores only touch the interior.
    buf_ref[...] = jnp.zeros(buf_ref.shape, buf_ref.dtype)

    # Boundary-validity masks for the 9 taps (shared by every layer / image).
    q = jax.lax.broadcasted_iota(jnp.int32, (1, L), 1)
    col = q % W                  # x position within a row
    pos = q % (H * W)            # flat position within one image
    taps = [(ky - 1, kx - 1) for ky in range(3) for kx in range(3)]
    masks = [
        (col + dx >= 0) & (col + dx < W) &
        (pos + dy * W >= 0) & (pos + dy * W < H * W)
        for (dy, dx) in taps
    ]

    x_in = x_ref[...].astype(jnp.float32)   # padded channels are zero
    act = x_in
    for l in range(n_layers):
        w = w_refs[l][...].astype(jnp.float32)     # (Cout_l, 9*Cin_l)
        b = b_refs[l][...].astype(jnp.float32)     # (Cout_l, 1)
        cin = act.shape[0]

        # Stage the activation in the zero-padded scratch so the 9 spatial
        # shifts become static in-VMEM window reads (halo handled in-kernel).
        buf_ref[0:cin, pad:pad + L] = act

        pieces = []
        for k, (dy, dx) in enumerate(taps):
            start = pad + dy * W + dx
            window = buf_ref[0:cin, start:start + L]
            pieces.append(jnp.where(masks[k], window, 0.0))
        patches = jnp.concatenate(pieces, axis=0)  # (9*Cin_l, L) im2col

        # One MXU pass per layer: K = 9*Cin, lane dim = N*H*W, f32 accumulate.
        y = jax.lax.dot_general(
            w, patches,
            dimension_numbers=(((1,), (0,)), ((), ())),
            preferred_element_type=jnp.float32) + b

        if l < n_layers - 1:
            act = jnp.where(y >= 0, y, neg_slope * y)   # LeakyReLU
        else:
            act = y + x_in[0:ch_out, :]                 # out_conv(x) + x_in

    o_ref[...] = act.astype(o_ref.dtype)


# ------------------------------- wrappers -----------------------------------

def _prep_weight(w_oihw, cin_pad=None):
    """PyTorch (Cout, Cin, 3, 3) -> im2col (Cout, 9*Cin_pad).

    Column index = (ky*3 + kx) * Cin_pad + cin, matching the patch build order
    inside the kernel (taps row-major, channels innermost).
    """
    cout, cin, kh, kw = w_oihw.shape
    w = jnp.transpose(w_oihw, (0, 2, 3, 1))               # (Cout, 3, 3, Cin)
    if cin_pad is None:
        cin_pad = cin
    if cin_pad > cin:
        w = jnp.pad(w, ((0, 0), (0, 0), (0, 0), (0, cin_pad - cin)))
    return w.reshape(cout, kh * kw * cin_pad)


def simple_cnn_forward_pallas(params, x_nchw):
    """Forward pass of simple_CNN (nl_type='relu' == LeakyReLU, bn=False)."""
    N, ch_in, H, W = x_nchw.shape
    w_in, b_in = params["in_conv"]
    w_out, b_out = params["out_conv"]
    ch = w_in.shape[0]
    ch_out = w_out.shape[0]
    L = N * H * W

    def _pad8(c):
        return -(-c // 8) * 8

    c_in_pad = _pad8(ch_in)
    c_scr = max(c_in_pad, ch)

    # NCHW -> channel-major flat (C, N*H*W); zero-pad channels to a sublane
    # multiple so every im2col piece is 8-row aligned.
    x_cm = jnp.transpose(x_nchw, (1, 0, 2, 3)).reshape(ch_in, L)
    x_cm = jnp.pad(x_cm, ((0, c_in_pad - ch_in), (0, 0)))

    layers = [(_prep_weight(w_in, c_in_pad), b_in.reshape(-1, 1))]
    for (w, b) in params["conv_list"]:
        layers.append((_prep_weight(w), b.reshape(-1, 1)))
    layers.append((_prep_weight(w_out), b_out.reshape(-1, 1)))
    n_layers = len(layers)

    args = [x_cm]
    for (w, b) in layers:
        args.extend((w, b))

    vmem = pl.BlockSpec(memory_space=pltpu.MemorySpace.VMEM)
    kernel = functools.partial(
        _fused_cnn_kernel, H=H, W=W, ch_out=ch_out,
        n_layers=n_layers, neg_slope=NEG_SLOPE)

    out_cm = pl.pallas_call(
        kernel,
        out_shape=jax.ShapeDtypeStruct((ch_out, L), x_nchw.dtype),
        in_specs=[vmem] * len(args),
        out_specs=vmem,
        scratch_shapes=[pltpu.VMEM((c_scr, L + 2 * (W + 1)), jnp.float32)],
    )(*args)

    # channel-major flat -> NCHW
    return jnp.transpose(out_cm.reshape(ch_out, N, H, W), (1, 0, 2, 3))


def init_simple_cnn_params(key, ch_in=3, ch_out=3, ch=8, depth=4):
    """Deterministic synthetic parameters (PyTorch OIHW convention)."""
    def conv_params(k, cin, cout):
        kw, kb = jax.random.split(k)
        fan_in = cin * 9
        w = jax.random.uniform(kw, (cout, cin, 3, 3), jnp.float32,
                               -1.0, 1.0) / jnp.sqrt(float(fan_in))
        b = jax.random.uniform(kb, (cout,), jnp.float32,
                               -1.0, 1.0) / jnp.sqrt(float(fan_in))
        return w, b

    keys = jax.random.split(key, depth)
    return {
        "in_conv": conv_params(keys[0], ch_in, ch),
        "conv_list": [conv_params(keys[1 + i], ch, ch) for i in range(depth - 2)],
        "out_conv": conv_params(keys[depth - 1], ch, ch_out),
    }


# ------------------------ pure-JAX reference (check) ------------------------

def simple_cnn_forward_ref(params, x_nchw):
    def conv(x, w, b):
        y = jax.lax.conv_general_dilated(
            x, w, window_strides=(1, 1), padding=((1, 1), (1, 1)),
            dimension_numbers=("NCHW", "OIHW", "NCHW"))
        return y + b[None, :, None, None]

    def lrelu(x):
        return jnp.where(x >= 0, x, NEG_SLOPE * x)

    x = lrelu(conv(x_nchw, *params["in_conv"]))
    for wb in params["conv_list"]:
        x = lrelu(conv(x, *wb))
    return conv(x, *params["out_conv"]) + x_nchw


# --------------------------------- main --------------------------------------

if __name__ == "__main__":
    key = jax.random.PRNGKey(0)
    k_param, k_x = jax.random.split(key)

    # small shapes consistent with the module: ch_in=ch_out=3, ch=8, depth=4
    N, CH_IN, CH_OUT, CH, DEPTH, H, W = 2, 3, 3, 8, 4, 16, 16

    params = init_simple_cnn_params(k_param, ch_in=CH_IN, ch_out=CH_OUT,
                                    ch=CH, depth=DEPTH)
    x = jax.random.normal(k_x, (N, CH_IN, H, W), jnp.float32)

    out = jax.block_until_ready(simple_cnn_forward_pallas(params, x))
    ref = jax.block_until_ready(simple_cnn_forward_ref(params, x))

    assert out.shape == (N, CH_OUT, H, W)
    assert jnp.allclose(out, ref, rtol=1e-4, atol=1e-4), float(
        jnp.max(jnp.abs(out - ref)))

    print("KERNEL_OK")
</pallas_src>

<mosaic_0001>
module attributes {stable_mosaic.version = 11 : i64} {
  func.func @_fused_cnn_kernel(%arg0: memref<8x512xf32, #tpu.memory_space<vmem>>, %arg1: memref<8x72xf32, #tpu.memory_space<vmem>>, %arg2: memref<8x1xf32, #tpu.memory_space<vmem>>, %arg3: memref<8x72xf32, #tpu.memory_space<vmem>>, %arg4: memref<8x1xf32, #tpu.memory_space<vmem>>, %arg5: memref<8x72xf32, #tpu.memory_space<vmem>>, %arg6: memref<8x1xf32, #tpu.memory_space<vmem>>, %arg7: memref<3x72xf32, #tpu.memory_space<vmem>>, %arg8: memref<3x1xf32, #tpu.memory_space<vmem>>, %arg9: memref<3x512xf32, #tpu.memory_space<vmem>>, %arg10: memref<8x546xf32, #tpu.memory_space<vmem>>) attributes {dimension_semantics = [], scalar_prefetch = 0 : i64, scratch_operands = 1 : i64, tpu.core_type = #tpu.core_type<tc>} {
    %cst = arith.constant 0.000000e+00 : f32
    %0 = vector.broadcast %cst : f32 to vector<8x546xf32>
    %c0 = arith.constant 0 : index
    %c0_0 = arith.constant 0 : index
    %1 = vector.load %arg10[%c0, %c0_0] : memref<8x546xf32, #tpu.memory_space<vmem>>, vector<8x546xf32>
    tpu.vector_store %arg10[%c0, %c0_0], %0 {strides = array<i32>} : memref<8x546xf32, #tpu.memory_space<vmem>>, vector<8x546xf32>,
    %2 = tpu.iota {dimensions = array<i32: 1>} : vector<1x512xi32>
    %c16_i32 = arith.constant 16 : i32
    %c0_i32 = arith.constant 0 : i32
    %3 = arith.cmpi eq, %c16_i32, %c0_i32 : i32
    %c1_i32 = arith.constant 1 : i32
    %4 = arith.select %3, %c1_i32, %c16_i32 : i32
    %5 = vector.broadcast %4 : i32 to vector<1x512xi32>
    %6 = arith.remsi %2, %5 : vector<1x512xi32>
    %c0_i32_1 = arith.constant 0 : i32
    %7 = vector.broadcast %c0_i32_1 : i32 to vector<1x512xi32>
    %8 = arith.cmpi ne, %6, %7 : vector<1x512xi32>
    %c0_i32_2 = arith.constant 0 : i32
    %9 = vector.broadcast %c0_i32_2 : i32 to vector<1x512xi32>
    %10 = arith.cmpi slt, %6, %9 : vector<1x512xi32>
    %c0_i32_3 = arith.constant 0 : i32
    %11 = arith.cmpi slt, %4, %c0_i32_3 : i32
    %12 = vector.broadcast %11 : i1 to vector<1x512xi1>
    %13 = vector.broadcast %12 : vector<1x512xi1> to vector<1x512xi1>
    %14 = arith.xori %10, %13 : vector<1x512xi1>
    %15 = arith.andi %14, %8 : vector<1x512xi1>
    %16 = vector.broadcast %4 : i32 to vector<1x512xi32>
    %17 = arith.addi %6, %16 : vector<1x512xi32>
    %18 = arith.select %15, %17, %6 : vector<1x512xi1>, vector<1x512xi32>
    %c256_i32 = arith.constant 256 : i32
    %c0_i32_4 = arith.constant 0 : i32
    %19 = arith.cmpi eq, %c256_i32, %c0_i32_4 : i32
    %c1_i32_5 = arith.constant 1 : i32
    %20 = arith.select %19, %c1_i32_5, %c256_i32 : i32
    %21 = vector.broadcast %20 : i32 to vector<1x512xi32>
    %22 = arith.remsi %2, %21 : vector<1x512xi32>
    %c0_i32_6 = arith.constant 0 : i32
    %23 = vector.broadcast %c0_i32_6 : i32 to vector<1x512xi32>
    %24 = arith.cmpi ne, %22, %23 : vector<1x512xi32>
    %c0_i32_7 = arith.constant 0 : i32
    %25 = vector.broadcast %c0_i32_7 : i32 to vector<1x512xi32>
    %26 = arith.cmpi slt, %22, %25 : vector<1x512xi32>
    %c0_i32_8 = arith.constant 0 : i32
    %27 = arith.cmpi slt, %20, %c0_i32_8 : i32
    %28 = vector.broadcast %27 : i1 to vector<1x512xi1>
    %29 = vector.broadcast %28 : vector<1x512xi1> to vector<1x512xi1>
    %30 = arith.xori %26, %29 : vector<1x512xi1>
    %31 = arith.andi %30, %24 : vector<1x512xi1>
    %32 = vector.broadcast %20 : i32 to vector<1x512xi32>
    %33 = arith.addi %22, %32 : vector<1x512xi32>
    %34 = arith.select %31, %33, %22 : vector<1x512xi1>, vector<1x512xi32>
    %c-1_i32 = arith.constant -1 : i32
    %35 = vector.broadcast %c-1_i32 : i32 to vector<1x512xi32>
    %36 = arith.addi %18, %35 : vector<1x512xi32>
    %c0_i32_9 = arith.constant 0 : i32
    %37 = vector.broadcast %c0_i32_9 : i32 to vector<1x512xi32>
    %38 = arith.cmpi sge, %36, %37 : vector<1x512xi32>
    %c-1_i32_10 = arith.constant -1 : i32
    %39 = vector.broadcast %c-1_i32_10 : i32 to vector<1x512xi32>
    %40 = arith.addi %18, %39 : vector<1x512xi32>
    %c16_i32_11 = arith.constant 16 : i32
    %41 = vector.broadcast %c16_i32_11 : i32 to vector<1x512xi32>
    %42 = arith.cmpi slt, %40, %41 : vector<1x512xi32>
    %43 = arith.andi %38, %42 : vector<1x512xi1>
    %c-16_i32 = arith.constant -16 : i32
    %44 = vector.broadcast %c-16_i32 : i32 to vector<1x512xi32>
    %45 = arith.addi %34, %44 : vector<1x512xi32>
    %c0_i32_12 = arith.constant 0 : i32
    %46 = vector.broadcast %c0_i32_12 : i32 to vector<1x512xi32>
    %47 = arith.cmpi sge, %45, %46 : vector<1x512xi32>
    %48 = arith.andi %43, %47 : vector<1x512xi1>
    %c-16_i32_13 = arith.constant -16 : i32
    %49 = vector.broadcast %c-16_i32_13 : i32 to vector<1x512xi32>
    %50 = arith.addi %34, %49 : vector<1x512xi32>
    %c256_i32_14 = arith.constant 256 : i32
    %51 = vector.broadcast %c256_i32_14 : i32 to vector<1x512xi32>
    %52 = arith.cmpi slt, %50, %51 : vector<1x512xi32>
    %53 = arith.andi %48, %52 : vector<1x512xi1>
    %c0_i32_15 = arith.constant 0 : i32
    %54 = vector.broadcast %c0_i32_15 : i32 to vector<1x512xi32>
    %55 = arith.addi %18, %54 : vector<1x512xi32>
    %c0_i32_16 = arith.constant 0 : i32
    %56 = vector.broadcast %c0_i32_16 : i32 to vector<1x512xi32>
    %57 = arith.cmpi sge, %55, %56 : vector<1x512xi32>
    %c0_i32_17 = arith.constant 0 : i32
    %58 = vector.broadcast %c0_i32_17 : i32 to vector<1x512xi32>
    %59 = arith.addi %18, %58 : vector<1x512xi32>
    %c16_i32_18 = arith.constant 16 : i32
    %60 = vector.broadcast %c16_i32_18 : i32 to vector<1x512xi32>
    %61 = arith.cmpi slt, %59, %60 : vector<1x512xi32>
    %62 = arith.andi %57, %61 : vector<1x512xi1>
    %c-16_i32_19 = arith.constant -16 : i32
    %63 = vector.broadcast %c-16_i32_19 : i32 to vector<1x512xi32>
    %64 = arith.addi %34, %63 : vector<1x512xi32>
    %c0_i32_20 = arith.constant 0 : i32
    %65 = vector.broadcast %c0_i32_20 : i32 to vector<1x512xi32>
    %66 = arith.cmpi sge, %64, %65 : vector<1x512xi32>
    %67 = arith.andi %62, %66 : vector<1x512xi1>
    %c-16_i32_21 = arith.constant -16 : i32
    %68 = vector.broadcast %c-16_i32_21 : i32 to vector<1x512xi32>
    %69 = arith.addi %34, %68 : vector<1x512xi32>
    %c256_i32_22 = arith.constant 256 : i32
    %70 = vector.broadcast %c256_i32_22 : i32 to vector<1x512xi32>
    %71 = arith.cmpi slt, %69, %70 : vector<1x512xi32>
    %72 = arith.andi %67, %71 : vector<1x512xi1>
    %c1_i32_23 = arith.constant 1 : i32
    %73 = vector.broadcast %c1_i32_23 : i32 to vector<1x512xi32>
    %74 = arith.addi %18, %73 : vector<1x512xi32>
    %c0_i32_24 = arith.constant 0 : i32
    %75 = vector.broadcast %c0_i32_24 : i32 to vector<1x512xi32>
    %76 = arith.cmpi sge, %74, %75 : vector<1x512xi32>
    %c1_i32_25 = arith.constant 1 : i32
    %77 = vector.broadcast %c1_i32_25 : i32 to vector<1x512xi32>
    %78 = arith.addi %18, %77 : vector<1x512xi32>
    %c16_i32_26 = arith.constant 16 : i32
    %79 = vector.broadcast %c16_i32_26 : i32 to vector<1x512xi32>
    %80 = arith.cmpi slt, %78, %79 : vector<1x512xi32>
    %81 = arith.andi %76, %80 : vector<1x512xi1>
    %c-16_i32_27 = arith.constant -16 : i32
    %82 = vector.broadcast %c-16_i32_27 : i32 to vector<1x512xi32>
    %83 = arith.addi %34, %82 : vector<1x512xi32>
    %c0_i32_28 = arith.constant 0 : i32
    %84 = vector.broadcast %c0_i32_28 : i32 to vector<1x512xi32>
    %85 = arith.cmpi sge, %83, %84 : vector<1x512xi32>
    %86 = arith.andi %81, %85 : vector<1x512xi1>
    %c-16_i32_29 = arith.constant -16 : i32
    %87 = vector.broadcast %c-16_i32_29 : i32 to vector<1x512xi32>
    %88 = arith.addi %34, %87 : vector<1x512xi32>
    %c256_i32_30 = arith.constant 256 : i32
    %89 = vector.broadcast %c256_i32_30 : i32 to vector<1x512xi32>
    %90 = arith.cmpi slt, %88, %89 : vector<1x512xi32>
    %91 = arith.andi %86, %90 : vector<1x512xi1>
    %c-1_i32_31 = arith.constant -1 : i32
    %92 = vector.broadcast %c-1_i32_31 : i32 to vector<1x512xi32>
    %93 = arith.addi %18, %92 : vector<1x512xi32>
    %c0_i32_32 = arith.constant 0 : i32
    %94 = vector.broadcast %c0_i32_32 : i32 to vector<1x512xi32>
    %95 = arith.cmpi sge, %93, %94 : vector<1x512xi32>
    %c-1_i32_33 = arith.constant -1 : i32
    %96 = vector.broadcast %c-1_i32_33 : i32 to vector<1x512xi32>
    %97 = arith.addi %18, %96 : vector<1x512xi32>
    %c16_i32_34 = arith.constant 16 : i32
    %98 = vector.broadcast %c16_i32_34 : i32 to vector<1x512xi32>
    %99 = arith.cmpi slt, %97, %98 : vector<1x512xi32>
    %100 = arith.andi %95, %99 : vector<1x512xi1>
    %c0_i32_35 = arith.constant 0 : i32
    %101 = vector.broadcast %c0_i32_35 : i32 to vector<1x512xi32>
    %102 = arith.addi %34, %101 : vector<1x512xi32>
    %c0_i32_36 = arith.constant 0 : i32
    %103 = vector.broadcast %c0_i32_36 : i32 to vector<1x512xi32>
    %104 = arith.cmpi sge, %102, %103 : vector<1x512xi32>
    %105 = arith.andi %100, %104 : vector<1x512xi1>
    %c0_i32_37 = arith.constant 0 : i32
    %106 = vector.broadcast %c0_i32_37 : i32 to vector<1x512xi32>
    %107 = arith.addi %34, %106 : vector<1x512xi32>
    %c256_i32_38 = arith.constant 256 : i32
    %108 = vector.broadcast %c256_i32_38 : i32 to vector<1x512xi32>
    %109 = arith.cmpi slt, %107, %108 : vector<1x512xi32>
    %110 = arith.andi %105, %109 : vector<1x512xi1>
    %c0_i32_39 = arith.constant 0 : i32
    %111 = vector.broadcast %c0_i32_39 : i32 to vector<1x512xi32>
    %112 = arith.addi %18, %111 : vector<1x512xi32>
    %c0_i32_40 = arith.constant 0 : i32
    %113 = vector.broadcast %c0_i32_40 : i32 to vector<1x512xi32>
    %114 = arith.cmpi sge, %112, %113 : vector<1x512xi32>
    %c0_i32_41 = arith.constant 0 : i32
    %115 = vector.broadcast %c0_i32_41 : i32 to vector<1x512xi32>
    %116 = arith.addi %18, %115 : vector<1x512xi32>
    %c16_i32_42 = arith.constant 16 : i32
    %117 = vector.broadcast %c16_i32_42 : i32 to vector<1x512xi32>
    %118 = arith.cmpi slt, %116, %117 : vector<1x512xi32>
    %119 = arith.andi %114, %118 : vector<1x512xi1>
    %c0_i32_43 = arith.constant 0 : i32
    %120 = vector.broadcast %c0_i32_43 : i32 to vector<1x512xi32>
    %121 = arith.addi %34, %120 : vector<1x512xi32>
    %c0_i32_44 = arith.constant 0 : i32
    %122 = vector.broadcast %c0_i32_44 : i32 to vector<1x512xi32>
    %123 = arith.cmpi sge, %121, %122 : vector<1x512xi32>
    %124 = arith.andi %119, %123 : vector<1x512xi1>
    %c0_i32_45 = arith.constant 0 : i32
    %125 = vector.broadcast %c0_i32_45 : i32 to vector<1x512xi32>
    %126 = arith.addi %34, %125 : vector<1x512xi32>
    %c256_i32_46 = arith.constant 256 : i32
    %127 = vector.broadcast %c256_i32_46 : i32 to vector<1x512xi32>
    %128 = arith.cmpi slt, %126, %127 : vector<1x512xi32>
    %129 = arith.andi %124, %128 : vector<1x512xi1>
    %c1_i32_47 = arith.constant 1 : i32
    %130 = vector.broadcast %c1_i32_47 : i32 to vector<1x512xi32>
    %131 = arith.addi %18, %130 : vector<1x512xi32>
    %c0_i32_48 = arith.constant 0 : i32
    %132 = vector.broadcast %c0_i32_48 : i32 to vector<1x512xi32>
    %133 = arith.cmpi sge, %131, %132 : vector<1x512xi32>
    %c1_i32_49 = arith.constant 1 : i32
    %134 = vector.broadcast %c1_i32_49 : i32 to vector<1x512xi32>
    %135 = arith.addi %18, %134 : vector<1x512xi32>
    %c16_i32_50 = arith.constant 16 : i32
    %136 = vector.broadcast %c16_i32_50 : i32 to vector<1x512xi32>
    %137 = arith.cmpi slt, %135, %136 : vector<1x512xi32>
    %138 = arith.andi %133, %137 : vector<1x512xi1>
    %c0_i32_51 = arith.constant 0 : i32
    %139 = vector.broadcast %c0_i32_51 : i32 to vector<1x512xi32>
    %140 = arith.addi %34, %139 : vector<1x512xi32>
    %c0_i32_52 = arith.constant 0 : i32
    %141 = vector.broadcast %c0_i32_52 : i32 to vector<1x512xi32>
    %142 = arith.cmpi sge, %140, %141 : vector<1x512xi32>
    %143 = arith.andi %138, %142 : vector<1x512xi1>
    %c0_i32_53 = arith.constant 0 : i32
    %144 = vector.broadcast %c0_i32_53 : i32 to vector<1x512xi32>
    %145 = arith.addi %34, %144 : vector<1x512xi32>
    %c256_i32_54 = arith.constant 256 : i32
    %146 = vector.broadcast %c256_i32_54 : i32 to vector<1x512xi32>
    %147 = arith.cmpi slt, %145, %146 : vector<1x512xi32>
    %148 = arith.andi %143, %147 : vector<1x512xi1>
    %c-1_i32_55 = arith.constant -1 : i32
    %149 = vector.broadcast %c-1_i32_55 : i32 to vector<1x512xi32>
    %150 = arith.addi %18, %149 : vector<1x512xi32>
    %c0_i32_56 = arith.constant 0 : i32
    %151 = vector.broadcast %c0_i32_56 : i32 to vector<1x512xi32>
    %152 = arith.cmpi sge, %150, %151 : vector<1x512xi32>
    %c-1_i32_57 = arith.constant -1 : i32
    %153 = vector.broadcast %c-1_i32_57 : i32 to vector<1x512xi32>
    %154 = arith.addi %18, %153 : vector<1x512xi32>
    %c16_i32_58 = arith.constant 16 : i32
    %155 = vector.broadcast %c16_i32_58 : i32 to vector<1x512xi32>
    %156 = arith.cmpi slt, %154, %155 : vector<1x512xi32>
    %157 = arith.andi %152, %156 : vector<1x512xi1>
    %c16_i32_59 = arith.constant 16 : i32
    %158 = vector.broadcast %c16_i32_59 : i32 to vector<1x512xi32>
    %159 = arith.addi %34, %158 : vector<1x512xi32>
    %c0_i32_60 = arith.constant 0 : i32
    %160 = vector.broadcast %c0_i32_60 : i32 to vector<1x512xi32>
    %161 = arith.cmpi sge, %159, %160 : vector<1x512xi32>
    %162 = arith.andi %157, %161 : vector<1x512xi1>
    %c16_i32_61 = arith.constant 16 : i32
    %163 = vector.broadcast %c16_i32_61 : i32 to vector<1x512xi32>
    %164 = arith.addi %34, %163 : vector<1x512xi32>
    %c256_i32_62 = arith.constant 256 : i32
    %165 = vector.broadcast %c256_i32_62 : i32 to vector<1x512xi32>
    %166 = arith.cmpi slt, %164, %165 : vector<1x512xi32>
    %167 = arith.andi %162, %166 : vector<1x512xi1>
    %c0_i32_63 = arith.constant 0 : i32
    %168 = vector.broadcast %c0_i32_63 : i32 to vector<1x512xi32>
    %169 = arith.addi %18, %168 : vector<1x512xi32>
    %c0_i32_64 = arith.constant 0 : i32
    %170 = vector.broadcast %c0_i32_64 : i32 to vector<1x512xi32>
    %171 = arith.cmpi sge, %169, %170 : vector<1x512xi32>
    %c0_i32_65 = arith.constant 0 : i32
    %172 = vector.broadcast %c0_i32_65 : i32 to vector<1x512xi32>
    %173 = arith.addi %18, %172 : vector<1x512xi32>
    %c16_i32_66 = arith.constant 16 : i32
    %174 = vector.broadcast %c16_i32_66 : i32 to vector<1x512xi32>
    %175 = arith.cmpi slt, %173, %174 : vector<1x512xi32>
    %176 = arith.andi %171, %175 : vector<1x512xi1>
    %c16_i32_67 = arith.constant 16 : i32
    %177 = vector.broadcast %c16_i32_67 : i32 to vector<1x512xi32>
    %178 = arith.addi %34, %177 : vector<1x512xi32>
    %c0_i32_68 = arith.constant 0 : i32
    %179 = vector.broadcast %c0_i32_68 : i32 to vector<1x512xi32>
    %180 = arith.cmpi sge, %178, %179 : vector<1x512xi32>
    %181 = arith.andi %176, %180 : vector<1x512xi1>
    %c16_i32_69 = arith.constant 16 : i32
    %182 = vector.broadcast %c16_i32_69 : i32 to vector<1x512xi32>
    %183 = arith.addi %34, %182 : vector<1x512xi32>
    %c256_i32_70 = arith.constant 256 : i32
    %184 = vector.broadcast %c256_i32_70 : i32 to vector<1x512xi32>
    %185 = arith.cmpi slt, %183, %184 : vector<1x512xi32>
    %186 = arith.andi %181, %185 : vector<1x512xi1>
    %c1_i32_71 = arith.constant 1 : i32
    %187 = vector.broadcast %c1_i32_71 : i32 to vector<1x512xi32>
    %188 = arith.addi %18, %187 : vector<1x512xi32>
    %c0_i32_72 = arith.constant 0 : i32
    %189 = vector.broadcast %c0_i32_72 : i32 to vector<1x512xi32>
    %190 = arith.cmpi sge, %188, %189 : vector<1x512xi32>
    %c1_i32_73 = arith.constant 1 : i32
    %191 = vector.broadcast %c1_i32_73 : i32 to vector<1x512xi32>
    %192 = arith.addi %18, %191 : vector<1x512xi32>
    %c16_i32_74 = arith.constant 16 : i32
    %193 = vector.broadcast %c16_i32_74 : i32 to vector<1x512xi32>
    %194 = arith.cmpi slt, %192, %193 : vector<1x512xi32>
    %195 = arith.andi %190, %194 : vector<1x512xi1>
    %c16_i32_75 = arith.constant 16 : i32
    %196 = vector.broadcast %c16_i32_75 : i32 to vector<1x512xi32>
    %197 = arith.addi %34, %196 : vector<1x512xi32>
    %c0_i32_76 = arith.constant 0 : i32
    %198 = vector.broadcast %c0_i32_76 : i32 to vector<1x512xi32>
    %199 = arith.cmpi sge, %197, %198 : vector<1x512xi32>
    %200 = arith.andi %195, %199 : vector<1x512xi1>
    %c16_i32_77 = arith.constant 16 : i32
    %201 = vector.broadcast %c16_i32_77 : i32 to vector<1x512xi32>
    %202 = arith.addi %34, %201 : vector<1x512xi32>
    %c256_i32_78 = arith.constant 256 : i32
    %203 = vector.broadcast %c256_i32_78 : i32 to vector<1x512xi32>
    %204 = arith.cmpi slt, %202, %203 : vector<1x512xi32>
    %205 = arith.andi %200, %204 : vector<1x512xi1>
    %c0_79 = arith.constant 0 : index
    %c0_80 = arith.constant 0 : index
    %206 = vector.load %arg0[%c0_79, %c0_80] : memref<8x512xf32, #tpu.memory_space<vmem>>, vector<8x512xf32>
    %c0_81 = arith.constant 0 : index
    %c0_82 = arith.constant 0 : index
    %207 = vector.load %arg1[%c0_81, %c0_82] : memref<8x72xf32, #tpu.memory_space<vmem>>, vector<8x72xf32>
    %c0_83 = arith.constant 0 : index
    %c0_84 = arith.constant 0 : index
    %208 = vector.load %arg2[%c0_83, %c0_84] : memref<8x1xf32, #tpu.memory_space<vmem>>, vector<8x1xf32>
    %c0_85 = arith.constant 0 : index
    %c17 = arith.constant 17 : index
    %209 = vector.load %arg10[%c0_85, %c17] : memref<8x546xf32, #tpu.memory_space<vmem>>, vector<8x512xf32>
    tpu.vector_store %arg10[%c0_85, %c17], %206 {strides = array<i32>} : memref<8x546xf32, #tpu.memory_space<vmem>>, vector<8x512xf32>,
    %c0_86 = arith.constant 0 : index
    %c0_87 = arith.constant 0 : index
    %210 = vector.load %arg10[%c0_86, %c0_87] : memref<8x546xf32, #tpu.memory_space<vmem>>, vector<8x512xf32>
    %cst_88 = arith.constant 0.000000e+00 : f32
    %211 = vector.shape_cast %53 : vector<1x512xi1> to vector<1x512xi1>
    %212 = vector.broadcast %211 : vector<1x512xi1> to vector<8x512xi1>
    %213 = vector.broadcast %cst_88 : f32 to vector<8x512xf32>
    %214 = arith.select %212, %210, %213 : vector<8x512xi1>, vector<8x512xf32>
    %c0_89 = arith.constant 0 : index
    %c1 = arith.constant 1 : index
    %215 = vector.load %arg10[%c0_89, %c1] : memref<8x546xf32, #tpu.memory_space<vmem>>, vector<8x512xf32>
    %cst_90 = arith.constant 0.000000e+00 : f32
    %216 = vector.shape_cast %72 : vector<1x512xi1> to vector<1x512xi1>
    %217 = vector.broadcast %216 : vector<1x512xi1> to vector<8x512xi1>
    %218 = vector.broadcast %cst_90 : f32 to vector<8x512xf32>
    %219 = arith.select %217, %215, %218 : vector<8x512xi1>, vector<8x512xf32>
    %c0_91 = arith.constant 0 : index
    %c2 = arith.constant 2 : index
    %220 = vector.load %arg10[%c0_91, %c2] : memref<8x546xf32, #tpu.memory_space<vmem>>, vector<8x512xf32>
    %cst_92 = arith.constant 0.000000e+00 : f32
    %221 = vector.shape_cast %91 : vector<1x512xi1> to vector<1x512xi1>
    %222 = vector.broadcast %221 : vector<1x512xi1> to vector<8x512xi1>
    %223 = vector.broadcast %cst_92 : f32 to vector<8x512xf32>
    %224 = arith.select %222, %220, %223 : vector<8x512xi1>, vector<8x512xf32>
    %c0_93 = arith.constant 0 : index
    %c16 = arith.constant 16 : index
    %225 = vector.load %arg10[%c0_93, %c16] : memref<8x546xf32, #tpu.memory_space<vmem>>, vector<8x512xf32>
    %cst_94 = arith.constant 0.000000e+00 : f32
    %226 = vector.shape_cast %110 : vector<1x512xi1> to vector<1x512xi1>
    %227 = vector.broadcast %226 : vector<1x512xi1> to vector<8x512xi1>
    %228 = vector.broadcast %cst_94 : f32 to vector<8x512xf32>
    %229 = arith.select %227, %225, %228 : vector<8x512xi1>, vector<8x512xf32>
    %c0_95 = arith.constant 0 : index
    %c17_96 = arith.constant 17 : index
    %230 = vector.load %arg10[%c0_95, %c17_96] : memref<8x546xf32, #tpu.memory_space<vmem>>, vector<8x512xf32>
    %cst_97 = arith.constant 0.000000e+00 : f32
    %231 = vector.shape_cast %129 : vector<1x512xi1> to vector<1x512xi1>
    %232 = vector.broadcast %231 : vector<1x512xi1> to vector<8x512xi1>
    %233 = vector.broadcast %cst_97 : f32 to vector<8x512xf32>
    %234 = arith.select %232, %230, %233 : vector<8x512xi1>, vector<8x512xf32>
    %c0_98 = arith.constant 0 : index
    %c18 = arith.constant 18 : index
    %235 = vector.load %arg10[%c0_98, %c18] : memref<8x546xf32, #tpu.memory_space<vmem>>, vector<8x512xf32>
    %cst_99 = arith.constant 0.000000e+00 : f32
    %236 = vector.shape_cast %148 : vector<1x512xi1> to vector<1x512xi1>
    %237 = vector.broadcast %236 : vector<1x512xi1> to vector<8x512xi1>
    %238 = vector.broadcast %cst_99 : f32 to vector<8x512xf32>
    %239 = arith.select %237, %235, %238 : vector<8x512xi1>, vector<8x512xf32>
    %c0_100 = arith.constant 0 : index
    %c32 = arith.constant 32 : index
    %240 = vector.load %arg10[%c0_100, %c32] : memref<8x546xf32, #tpu.memory_space<vmem>>, vector<8x512xf32>
    %cst_101 = arith.constant 0.000000e+00 : f32
    %241 = vector.shape_cast %167 : vector<1x512xi1> to vector<1x512xi1>
    %242 = vector.broadcast %241 : vector<1x512xi1> to vector<8x512xi1>
    %243 = vector.broadcast %cst_101 : f32 to vector<8x512xf32>
    %244 = arith.select %242, %240, %243 : vector<8x512xi1>, vector<8x512xf32>
    %c0_102 = arith.constant 0 : index
    %c33 = arith.constant 33 : index
    %245 = vector.load %arg10[%c0_102, %c33] : memref<8x546xf32, #tpu.memory_space<vmem>>, vector<8x512xf32>
    %cst_103 = arith.constant 0.000000e+00 : f32
    %246 = vector.shape_cast %186 : vector<1x512xi1> to vector<1x512xi1>
    %247 = vector.broadcast %246 : vector<1x512xi1> to vector<8x512xi1>
    %248 = vector.broadcast %cst_103 : f32 to vector<8x512xf32>
    %249 = arith.select %247, %245, %248 : vector<8x512xi1>, vector<8x512xf32>
    %c0_104 = arith.constant 0 : index
    %c34 = arith.constant 34 : index
    %250 = vector.load %arg10[%c0_104, %c34] : memref<8x546xf32, #tpu.memory_space<vmem>>, vector<8x512xf32>
    %cst_105 = arith.constant 0.000000e+00 : f32
    %251 = vector.shape_cast %205 : vector<1x512xi1> to vector<1x512xi1>
    %252 = vector.broadcast %251 : vector<1x512xi1> to vector<8x512xi1>
    %253 = vector.broadcast %cst_105 : f32 to vector<8x512xf32>
    %254 = arith.select %252, %250, %253 : vector<8x512xi1>, vector<8x512xf32>
    %255 = tpu.concatenate %214, %219, %224, %229, %234, %239, %244, %249, %254 in 0 : vector<8x512xf32>, vector<8x512xf32>, vector<8x512xf32>, vector<8x512xf32>, vector<8x512xf32>, vector<8x512xf32>, vector<8x512xf32>, vector<8x512xf32>, vector<8x512xf32> -> vector<72x512xf32>
    %cst_106 = arith.constant dense<0.000000e+00> : vector<8x512xf32>
    %256 = tpu.matmul %207, %255, %cst_106 {dimension_numbers = #tpu.dot_dimension_numbers<[1], [0], [0], [1], [0, 0, 1, 1], [], []>} : vector<8x72xf32>, vector<72x512xf32>, vector<8x512xf32> -> vector<8x512xf32>
    %257 = vector.broadcast %208 : vector<8x1xf32> to vector<8x512xf32>
    %258 = arith.addf %256, %257 : vector<8x512xf32>
    %cst_107 = arith.constant 0.000000e+00 : f32
    %259 = vector.broadcast %cst_107 : f32 to vector<8x512xf32>
    %260 = arith.cmpf oge, %258, %259 : vector<8x512xf32>
    %cst_108 = arith.constant 0.00999999977 : f32
    %261 = vector.broadcast %cst_108 : f32 to vector<8x512xf32>
    %262 = arith.mulf %261, %258 : vector<8x512xf32>
    %263 = arith.select %260, %258, %262 : vector<8x512xi1>, vector<8x512xf32>
    %c0_109 = arith.constant 0 : index
    %c0_110 = arith.constant 0 : index
    %264 = vector.load %arg3[%c0_109, %c0_110] : memref<8x72xf32, #tpu.memory_space<vmem>>, vector<8x72xf32>
    %c0_111 = arith.constant 0 : index
    %c0_112 = arith.constant 0 : index
    %265 = vector.load %arg4[%c0_111, %c0_112] : memref<8x1xf32, #tpu.memory_space<vmem>>, vector<8x1xf32>
    %c0_113 = arith.constant 0 : index
    %c17_114 = arith.constant 17 : index
    %266 = vector.load %arg10[%c0_113, %c17_114] : memref<8x546xf32, #tpu.memory_space<vmem>>, vector<8x512xf32>
    tpu.vector_store %arg10[%c0_113, %c17_114], %263 {strides = array<i32>} : memref<8x546xf32, #tpu.memory_space<vmem>>, vector<8x512xf32>,
    %c0_115 = arith.constant 0 : index
    %c0_116 = arith.constant 0 : index
    %267 = vector.load %arg10[%c0_115, %c0_116] : memref<8x546xf32, #tpu.memory_space<vmem>>, vector<8x512xf32>
    %cst_117 = arith.constant 0.000000e+00 : f32
    %268 = vector.shape_cast %53 : vector<1x512xi1> to vector<1x512xi1>
    %269 = vector.broadcast %268 : vector<1x512xi1> to vector<8x512xi1>
    %270 = vector.broadcast %cst_117 : f32 to vector<8x512xf32>
    %271 = arith.select %269, %267, %270 : vector<8x512xi1>, vector<8x512xf32>
    %c0_118 = arith.constant 0 : index
    %c1_119 = arith.constant 1 : index
    %272 = vector.load %arg10[%c0_118, %c1_119] : memref<8x546xf32, #tpu.memory_space<vmem>>, vector<8x512xf32>
    %cst_120 = arith.constant 0.000000e+00 : f32
    %273 = vector.shape_cast %72 : vector<1x512xi1> to vector<1x512xi1>
    %274 = vector.broadcast %273 : vector<1x512xi1> to vector<8x512xi1>
    %275 = vector.broadcast %cst_120 : f32 to vector<8x512xf32>
    %276 = arith.select %274, %272, %275 : vector<8x512xi1>, vector<8x512xf32>
    %c0_121 = arith.constant 0 : index
    %c2_122 = arith.constant 2 : index
    %277 = vector.load %arg10[%c0_121, %c2_122] : memref<8x546xf32, #tpu.memory_space<vmem>>, vector<8x512xf32>
    %cst_123 = arith.constant 0.000000e+00 : f32
    %278 = vector.shape_cast %91 : vector<1x512xi1> to vector<1x512xi1>
    %279 = vector.broadcast %278 : vector<1x512xi1> to vector<8x512xi1>
    %280 = vector.broadcast %cst_123 : f32 to vector<8x512xf32>
    %281 = arith.select %279, %277, %280 : vector<8x512xi1>, vector<8x512xf32>
    %c0_124 = arith.constant 0 : index
    %c16_125 = arith.constant 16 : index
    %282 = vector.load %arg10[%c0_124, %c16_125] : memref<8x546xf32, #tpu.memory_space<vmem>>, vector<8x512xf32>
    %cst_126 = arith.constant 0.000000e+00 : f32
    %283 = vector.shape_cast %110 : vector<1x512xi1> to vector<1x512xi1>
    %284 = vector.broadcast %283 : vector<1x512xi1> to vector<8x512xi1>
    %285 = vector.broadcast %cst_126 : f32 to vector<8x512xf32>
    %286 = arith.select %284, %282, %285 : vector<8x512xi1>, vector<8x512xf32>
    %c0_127 = arith.constant 0 : index
    %c17_128 = arith.constant 17 : index
    %287 = vector.load %arg10[%c0_127, %c17_128] : memref<8x546xf32, #tpu.memory_space<vmem>>, vector<8x512xf32>
    %cst_129 = arith.constant 0.000000e+00 : f32
    %288 = vector.shape_cast %129 : vector<1x512xi1> to vector<1x512xi1>
    %289 = vector.broadcast %288 : vector<1x512xi1> to vector<8x512xi1>
    %290 = vector.broadcast %cst_129 : f32 to vector<8x512xf32>
    %291 = arith.select %289, %287, %290 : vector<8x512xi1>, vector<8x512xf32>
    %c0_130 = arith.constant 0 : index
    %c18_131 = arith.constant 18 : index
    %292 = vector.load %arg10[%c0_130, %c18_131] : memref<8x546xf32, #tpu.memory_space<vmem>>, vector<8x512xf32>
    %cst_132 = arith.constant 0.000000e+00 : f32
    %293 = vector.shape_cast %148 : vector<1x512xi1> to vector<1x512xi1>
    %294 = vector.broadcast %293 : vector<1x512xi1> to vector<8x512xi1>
    %295 = vector.broadcast %cst_132 : f32 to vector<8x512xf32>
    %296 = arith.select %294, %292, %295 : vector<8x512xi1>, vector<8x512xf32>
    %c0_133 = arith.constant 0 : index
    %c32_134 = arith.constant 32 : index
    %297 = vector.load %arg10[%c0_133, %c32_134] : memref<8x546xf32, #tpu.memory_space<vmem>>, vector<8x512xf32>
    %cst_135 = arith.constant 0.000000e+00 : f32
    %298 = vector.shape_cast %167 : vector<1x512xi1> to vector<1x512xi1>
    %299 = vector.broadcast %298 : vector<1x512xi1> to vector<8x512xi1>
    %300 = vector.broadcast %cst_135 : f32 to vector<8x512xf32>
    %301 = arith.select %299, %297, %300 : vector<8x512xi1>, vector<8x512xf32>
    %c0_136 = arith.constant 0 : index
    %c33_137 = arith.constant 33 : index
    %302 = vector.load %arg10[%c0_136, %c33_137] : memref<8x546xf32, #tpu.memory_space<vmem>>, vector<8x512xf32>
    %cst_138 = arith.constant 0.000000e+00 : f32
    %303 = vector.shape_cast %186 : vector<1x512xi1> to vector<1x512xi1>
    %304 = vector.broadcast %303 : vector<1x512xi1> to vector<8x512xi1>
    %305 = vector.broadcast %cst_138 : f32 to vector<8x512xf32>
    %306 = arith.select %304, %302, %305 : vector<8x512xi1>, vector<8x512xf32>
    %c0_139 = arith.constant 0 : index
    %c34_140 = arith.constant 34 : index
    %307 = vector.load %arg10[%c0_139, %c34_140] : memref<8x546xf32, #tpu.memory_space<vmem>>, vector<8x512xf32>
    %cst_141 = arith.constant 0.000000e+00 : f32
    %308 = vector.shape_cast %205 : vector<1x512xi1> to vector<1x512xi1>
    %309 = vector.broadcast %308 : vector<1x512xi1> to vector<8x512xi1>
    %310 = vector.broadcast %cst_141 : f32 to vector<8x512xf32>
    %311 = arith.select %309, %307, %310 : vector<8x512xi1>, vector<8x512xf32>
    %312 = tpu.concatenate %271, %276, %281, %286, %291, %296, %301, %306, %311 in 0 : vector<8x512xf32>, vector<8x512xf32>, vector<8x512xf32>, vector<8x512xf32>, vector<8x512xf32>, vector<8x512xf32>, vector<8x512xf32>, vector<8x512xf32>, vector<8x512xf32> -> vector<72x512xf32>
    %cst_142 = arith.constant dense<0.000000e+00> : vector<8x512xf32>
    %313 = tpu.matmul %264, %312, %cst_142 {dimension_numbers = #tpu.dot_dimension_numbers<[1], [0], [0], [1], [0, 0, 1, 1], [], []>} : vector<8x72xf32>, vector<72x512xf32>, vector<8x512xf32> -> vector<8x512xf32>
    %314 = vector.broadcast %265 : vector<8x1xf32> to vector<8x512xf32>
    %315 = arith.addf %313, %314 : vector<8x512xf32>
    %cst_143 = arith.constant 0.000000e+00 : f32
    %316 = vector.broadcast %cst_143 : f32 to vector<8x512xf32>
    %317 = arith.cmpf oge, %315, %316 : vector<8x512xf32>
    %cst_144 = arith.constant 0.00999999977 : f32
    %318 = vector.broadcast %cst_144 : f32 to vector<8x512xf32>
    %319 = arith.mulf %318, %315 : vector<8x512xf32>
    %320 = arith.select %317, %315, %319 : vector<8x512xi1>, vector<8x512xf32>
    %c0_145 = arith.constant 0 : index
    %c0_146 = arith.constant 0 : index
    %321 = vector.load %arg5[%c0_145, %c0_146] : memref<8x72xf32, #tpu.memory_space<vmem>>, vector<8x72xf32>
    %c0_147 = arith.constant 0 : index
    %c0_148 = arith.constant 0 : index
    %322 = vector.load %arg6[%c0_147, %c0_148] : memref<8x1xf32, #tpu.memory_space<vmem>>, vector<8x1xf32>
    %c0_149 = arith.constant 0 : index
    %c17_150 = arith.constant 17 : index
    %323 = vector.load %arg10[%c0_149, %c17_150] : memref<8x546xf32, #tpu.memory_space<vmem>>, vector<8x512xf32>
    tpu.vector_store %arg10[%c0_149, %c17_150], %320 {strides = array<i32>} : memref<8x546xf32, #tpu.memory_space<vmem>>, vector<8x512xf32>,
    %c0_151 = arith.constant 0 : index
    %c0_152 = arith.constant 0 : index
    %324 = vector.load %arg10[%c0_151, %c0_152] : memref<8x546xf32, #tpu.memory_space<vmem>>, vector<8x512xf32>
    %cst_153 = arith.constant 0.000000e+00 : f32
    %325 = vector.shape_cast %53 : vector<1x512xi1> to vector<1x512xi1>
    %326 = vector.broadcast %325 : vector<1x512xi1> to vector<8x512xi1>
    %327 = vector.broadcast %cst_153 : f32 to vector<8x512xf32>
    %328 = arith.select %326, %324, %327 : vector<8x512xi1>, vector<8x512xf32>
    %c0_154 = arith.constant 0 : index
    %c1_155 = arith.constant 1 : index
    %329 = vector.load %arg10[%c0_154, %c1_155] : memref<8x546xf32, #tpu.memory_space<vmem>>, vector<8x512xf32>
    %cst_156 = arith.constant 0.000000e+00 : f32
    %330 = vector.shape_cast %72 : vector<1x512xi1> to vector<1x512xi1>
    %331 = vector.broadcast %330 : vector<1x512xi1> to vector<8x512xi1>
    %332 = vector.broadcast %cst_156 : f32 to vector<8x512xf32>
    %333 = arith.select %331, %329, %332 : vector<8x512xi1>, vector<8x512xf32>
    %c0_157 = arith.constant 0 : index
    %c2_158 = arith.constant 2 : index
    %334 = vector.load %arg10[%c0_157, %c2_158] : memref<8x546xf32, #tpu.memory_space<vmem>>, vector<8x512xf32>
    %cst_159 = arith.constant 0.000000e+00 : f32
    %335 = vector.shape_cast %91 : vector<1x512xi1> to vector<1x512xi1>
    %336 = vector.broadcast %335 : vector<1x512xi1> to vector<8x512xi1>
    %337 = vector.broadcast %cst_159 : f32 to vector<8x512xf32>
    %338 = arith.select %336, %334, %337 : vector<8x512xi1>, vector<8x512xf32>
    %c0_160 = arith.constant 0 : index
    %c16_161 = arith.constant 16 : index
    %339 = vector.load %arg10[%c0_160, %c16_161] : memref<8x546xf32, #tpu.memory_space<vmem>>, vector<8x512xf32>
    %cst_162 = arith.constant 0.000000e+00 : f32
    %340 = vector.shape_cast %110 : vector<1x512xi1> to vector<1x512xi1>
    %341 = vector.broadcast %340 : vector<1x512xi1> to vector<8x512xi1>
    %342 = vector.broadcast %cst_162 : f32 to vector<8x512xf32>
    %343 = arith.select %341, %339, %342 : vector<8x512xi1>, vector<8x512xf32>
    %c0_163 = arith.constant 0 : index
    %c17_164 = arith.constant 17 : index
    %344 = vector.load %arg10[%c0_163, %c17_164] : memref<8x546xf32, #tpu.memory_space<vmem>>, vector<8x512xf32>
    %cst_165 = arith.constant 0.000000e+00 : f32
    %345 = vector.shape_cast %129 : vector<1x512xi1> to vector<1x512xi1>
    %346 = vector.broadcast %345 : vector<1x512xi1> to vector<8x512xi1>
    %347 = vector.broadcast %cst_165 : f32 to vector<8x512xf32>
    %348 = arith.select %346, %344, %347 : vector<8x512xi1>, vector<8x512xf32>
    %c0_166 = arith.constant 0 : index
    %c18_167 = arith.constant 18 : index
    %349 = vector.load %arg10[%c0_166, %c18_167] : memref<8x546xf32, #tpu.memory_space<vmem>>, vector<8x512xf32>
    %cst_168 = arith.constant 0.000000e+00 : f32
    %350 = vector.shape_cast %148 : vector<1x512xi1> to vector<1x512xi1>
    %351 = vector.broadcast %350 : vector<1x512xi1> to vector<8x512xi1>
    %352 = vector.broadcast %cst_168 : f32 to vector<8x512xf32>
    %353 = arith.select %351, %349, %352 : vector<8x512xi1>, vector<8x512xf32>
    %c0_169 = arith.constant 0 : index
    %c32_170 = arith.constant 32 : index
    %354 = vector.load %arg10[%c0_169, %c32_170] : memref<8x546xf32, #tpu.memory_space<vmem>>, vector<8x512xf32>
    %cst_171 = arith.constant 0.000000e+00 : f32
    %355 = vector.shape_cast %167 : vector<1x512xi1> to vector<1x512xi1>
    %356 = vector.broadcast %355 : vector<1x512xi1> to vector<8x512xi1>
    %357 = vector.broadcast %cst_171 : f32 to vector<8x512xf32>
    %358 = arith.select %356, %354, %357 : vector<8x512xi1>, vector<8x512xf32>
    %c0_172 = arith.constant 0 : index
    %c33_173 = arith.constant 33 : index
    %359 = vector.load %arg10[%c0_172, %c33_173] : memref<8x546xf32, #tpu.memory_space<vmem>>, vector<8x512xf32>
    %cst_174 = arith.constant 0.000000e+00 : f32
    %360 = vector.shape_cast %186 : vector<1x512xi1> to vector<1x512xi1>
    %361 = vector.broadcast %360 : vector<1x512xi1> to vector<8x512xi1>
    %362 = vector.broadcast %cst_174 : f32 to vector<8x512xf32>
    %363 = arith.select %361, %359, %362 : vector<8x512xi1>, vector<8x512xf32>
    %c0_175 = arith.constant 0 : index
    %c34_176 = arith.constant 34 : index
    %364 = vector.load %arg10[%c0_175, %c34_176] : memref<8x546xf32, #tpu.memory_space<vmem>>, vector<8x512xf32>
    %cst_177 = arith.constant 0.000000e+00 : f32
    %365 = vector.shape_cast %205 : vector<1x512xi1> to vector<1x512xi1>
    %366 = vector.broadcast %365 : vector<1x512xi1> to vector<8x512xi1>
    %367 = vector.broadcast %cst_177 : f32 to vector<8x512xf32>
    %368 = arith.select %366, %364, %367 : vector<8x512xi1>, vector<8x512xf32>
    %369 = tpu.concatenate %328, %333, %338, %343, %348, %353, %358, %363, %368 in 0 : vector<8x512xf32>, vector<8x512xf32>, vector<8x512xf32>, vector<8x512xf32>, vector<8x512xf32>, vector<8x512xf32>, vector<8x512xf32>, vector<8x512xf32>, vector<8x512xf32> -> vector<72x512xf32>
    %cst_178 = arith.constant dense<0.000000e+00> : vector<8x512xf32>
    %370 = tpu.matmul %321, %369, %cst_178 {dimension_numbers = #tpu.dot_dimension_numbers<[1], [0], [0], [1], [0, 0, 1, 1], [], []>} : vector<8x72xf32>, vector<72x512xf32>, vector<8x512xf32> -> vector<8x512xf32>
    %371 = vector.broadcast %322 : vector<8x1xf32> to vector<8x512xf32>
    %372 = arith.addf %370, %371 : vector<8x512xf32>
    %cst_179 = arith.constant 0.000000e+00 : f32
    %373 = vector.broadcast %cst_179 : f32 to vector<8x512xf32>
    %374 = arith.cmpf oge, %372, %373 : vector<8x512xf32>
    %cst_180 = arith.constant 0.00999999977 : f32
    %375 = vector.broadcast %cst_180 : f32 to vector<8x512xf32>
    %376 = arith.mulf %375, %372 : vector<8x512xf32>
    %377 = arith.select %374, %372, %376 : vector<8x512xi1>, vector<8x512xf32>
    %c0_181 = arith.constant 0 : index
    %c0_182 = arith.constant 0 : index
    %378 = vector.load %arg7[%c0_181, %c0_182] : memref<3x72xf32, #tpu.memory_space<vmem>>, vector<3x72xf32>
    %c0_183 = arith.constant 0 : index
    %c0_184 = arith.constant 0 : index
    %379 = vector.load %arg8[%c0_183, %c0_184] : memref<3x1xf32, #tpu.memory_space<vmem>>, vector<3x1xf32>
    %c0_185 = arith.constant 0 : index
    %c17_186 = arith.constant 17 : index
    %380 = vector.load %arg10[%c0_185, %c17_186] : memref<8x546xf32, #tpu.memory_space<vmem>>, vector<8x512xf32>
    tpu.vector_store %arg10[%c0_185, %c17_186], %377 {strides = array<i32>} : memref<8x546xf32, #tpu.memory_space<vmem>>, vector<8x512xf32>,
    %c0_187 = arith.constant 0 : index
    %c0_188 = arith.constant 0 : index
    %381 = vector.load %arg10[%c0_187, %c0_188] : memref<8x546xf32, #tpu.memory_space<vmem>>, vector<8x512xf32>
    %cst_189 = arith.constant 0.000000e+00 : f32
    %382 = vector.shape_cast %53 : vector<1x512xi1> to vector<1x512xi1>
    %383 = vector.broadcast %382 : vector<1x512xi1> to vector<8x512xi1>
    %384 = vector.broadcast %cst_189 : f32 to vector<8x512xf32>
    %385 = arith.select %383, %381, %384 : vector<8x512xi1>, vector<8x512xf32>
    %c0_190 = arith.constant 0 : index
    %c1_191 = arith.constant 1 : index
    %386 = vector.load %arg10[%c0_190, %c1_191] : memref<8x546xf32, #tpu.memory_space<vmem>>, vector<8x512xf32>
    %cst_192 = arith.constant 0.000000e+00 : f32
    %387 = vector.shape_cast %72 : vector<1x512xi1> to vector<1x512xi1>
    %388 = vector.broadcast %387 : vector<1x512xi1> to vector<8x512xi1>
    %389 = vector.broadcast %cst_192 : f32 to vector<8x512xf32>
    %390 = arith.select %388, %386, %389 : vector<8x512xi1>, vector<8x512xf32>
    %c0_193 = arith.constant 0 : index
    %c2_194 = arith.constant 2 : index
    %391 = vector.load %arg10[%c0_193, %c2_194] : memref<8x546xf32, #tpu.memory_space<vmem>>, vector<8x512xf32>
    %cst_195 = arith.constant 0.000000e+00 : f32
    %392 = vector.shape_cast %91 : vector<1x512xi1> to vector<1x512xi1>
    %393 = vector.broadcast %392 : vector<1x512xi1> to vector<8x512xi1>
    %394 = vector.broadcast %cst_195 : f32 to vector<8x512xf32>
    %395 = arith.select %393, %391, %394 : vector<8x512xi1>, vector<8x512xf32>
    %c0_196 = arith.constant 0 : index
    %c16_197 = arith.constant 16 : index
    %396 = vector.load %arg10[%c0_196, %c16_197] : memref<8x546xf32, #tpu.memory_space<vmem>>, vector<8x512xf32>
    %cst_198 = arith.constant 0.000000e+00 : f32
    %397 = vector.shape_cast %110 : vector<1x512xi1> to vector<1x512xi1>
    %398 = vector.broadcast %397 : vector<1x512xi1> to vector<8x512xi1>
    %399 = vector.broadcast %cst_198 : f32 to vector<8x512xf32>
    %400 = arith.select %398, %396, %399 : vector<8x512xi1>, vector<8x512xf32>
    %c0_199 = arith.constant 0 : index
    %c17_200 = arith.constant 17 : index
    %401 = vector.load %arg10[%c0_199, %c17_200] : memref<8x546xf32, #tpu.memory_space<vmem>>, vector<8x512xf32>
    %cst_201 = arith.constant 0.000000e+00 : f32
    %402 = vector.shape_cast %129 : vector<1x512xi1> to vector<1x512xi1>
    %403 = vector.broadcast %402 : vector<1x512xi1> to vector<8x512xi1>
    %404 = vector.broadcast %cst_201 : f32 to vector<8x512xf32>
    %405 = arith.select %403, %401, %404 : vector<8x512xi1>, vector<8x512xf32>
    %c0_202 = arith.constant 0 : index
    %c18_203 = arith.constant 18 : index
    %406 = vector.load %arg10[%c0_202, %c18_203] : memref<8x546xf32, #tpu.memory_space<vmem>>, vector<8x512xf32>
    %cst_204 = arith.constant 0.000000e+00 : f32
    %407 = vector.shape_cast %148 : vector<1x512xi1> to vector<1x512xi1>
    %408 = vector.broadcast %407 : vector<1x512xi1> to vector<8x512xi1>
    %409 = vector.broadcast %cst_204 : f32 to vector<8x512xf32>
    %410 = arith.select %408, %406, %409 : vector<8x512xi1>, vector<8x512xf32>
    %c0_205 = arith.constant 0 : index
    %c32_206 = arith.constant 32 : index
    %411 = vector.load %arg10[%c0_205, %c32_206] : memref<8x546xf32, #tpu.memory_space<vmem>>, vector<8x512xf32>
    %cst_207 = arith.constant 0.000000e+00 : f32
    %412 = vector.shape_cast %167 : vector<1x512xi1> to vector<1x512xi1>
    %413 = vector.broadcast %412 : vector<1x512xi1> to vector<8x512xi1>
    %414 = vector.broadcast %cst_207 : f32 to vector<8x512xf32>
    %415 = arith.select %413, %411, %414 : vector<8x512xi1>, vector<8x512xf32>
    %c0_208 = arith.constant 0 : index
    %c33_209 = arith.constant 33 : index
    %416 = vector.load %arg10[%c0_208, %c33_209] : memref<8x546xf32, #tpu.memory_space<vmem>>, vector<8x512xf32>
    %cst_210 = arith.constant 0.000000e+00 : f32
    %417 = vector.shape_cast %186 : vector<1x512xi1> to vector<1x512xi1>
    %418 = vector.broadcast %417 : vector<1x512xi1> to vector<8x512xi1>
    %419 = vector.broadcast %cst_210 : f32 to vector<8x512xf32>
    %420 = arith.select %418, %416, %419 : vector<8x512xi1>, vector<8x512xf32>
    %c0_211 = arith.constant 0 : index
    %c34_212 = arith.constant 34 : index
    %421 = vector.load %arg10[%c0_211, %c34_212] : memref<8x546xf32, #tpu.memory_space<vmem>>, vector<8x512xf32>
    %cst_213 = arith.constant 0.000000e+00 : f32
    %422 = vector.shape_cast %205 : vector<1x512xi1> to vector<1x512xi1>
    %423 = vector.broadcast %422 : vector<1x512xi1> to vector<8x512xi1>
    %424 = vector.broadcast %cst_213 : f32 to vector<8x512xf32>
    %425 = arith.select %423, %421, %424 : vector<8x512xi1>, vector<8x512xf32>
    %426 = tpu.concatenate %385, %390, %395, %400, %405, %410, %415, %420, %425 in 0 : vector<8x512xf32>, vector<8x512xf32>, vector<8x512xf32>, vector<8x512xf32>, vector<8x512xf32>, vector<8x512xf32>, vector<8x512xf32>, vector<8x512xf32>, vector<8x512xf32> -> vector<72x512xf32>
    %cst_214 = arith.constant dense<0.000000e+00> : vector<3x512xf32>
    %427 = tpu.matmul %378, %426, %cst_214 {dimension_numbers = #tpu.dot_dimension_numbers<[1], [0], [0], [1], [0, 0, 1, 1], [], []>} : vector<3x72xf32>, vector<72x512xf32>, vector<3x512xf32> -> vector<3x512xf32>
    %428 = vector.broadcast %379 : vector<3x1xf32> to vector<3x512xf32>
    %429 = arith.addf %427, %428 : vector<3x512xf32>
    %430 = vector.extract_strided_slice %206 {offsets = [0, 0], sizes = [3, 512], strides = [1, 1]} : vector<8x512xf32> to vector<3x512xf32>
    %431 = arith.addf %429, %430 : vector<3x512xf32>
    %c0_215 = arith.constant 0 : index
    %c0_216 = arith.constant 0 : index
    %432 = vector.load %arg9[%c0_215, %c0_216] : memref<3x512xf32, #tpu.memory_space<vmem>>, vector<3x512xf32>
    tpu.vector_store %arg9[%c0_215, %c0_216], %431 {strides = array<i32>} : memref<3x512xf32, #tpu.memory_space<vmem>>, vector<3x512xf32>,
    return
  }
}

</mosaic_0001>

<bundles_post_ra>
// kernel: tpu_custom_call.1
= control target key start
LH: loop header
LB: loop body
LE: loop exit
PB: predicated region body
PF: predicated region fallthrough
CT: control target
= control target key end

     0   :  { %14 = vsyncpa [#allocation4], 0  ;;  %s3170_s0 = inlined_call_operand.vmem [shape: f32[8,512], index: 0, kind: input, shape index: {}]   ;;  %s3171_s1 = inlined_call_operand.hbm [shape: f32[8,72], index: 1, kind: input, shape index: {}]   ;;  %s3172_s2 = inlined_call_operand.vmem [shape: f32[8,1], index: 2, kind: input, shape index: {}]   ;;  %s3173_s3 = inlined_call_operand.hbm [shape: f32[8,72], index: 3, kind: input, shape index: {}]   ;;  %s3174_s4 = inlined_call_operand.vmem [shape: f32[8,1], index: 4, kind: input, shape index: {}]   ;;  %s3175_s5 = inlined_call_operand.vmem [shape: f32[8,72], index: 5, kind: input, shape index: {}]   ;;  %s3176_s6 = inlined_call_operand.vmem [shape: f32[8,1], index: 6, kind: input, shape index: {}]   ;;  %s3177_s7 = inlined_call_operand.vmem [shape: f32[3,72], index: 7, kind: input, shape index: {}]   ;;  %s3178_s8 = inlined_call_operand.vmem [shape: f32[3,1], index: 8, kind: input, shape index: {}]   ;;  %s3179_s9 = inlined_call_operand.hbm [shape: f32[3,512], index: 9, kind: output, shape index: {}]  }
   0x1   :  { %15 = vsyncpa [#allocation7], 0 }
   0x2   :  { %16 = vsyncpa [#allocation5], 0  ;;  %s2139_s30 = smov [#allocation3]   ;;  %s2140_s11 = smov [#allocation6]  }
   0x3   :  { %s25_s10 = sshll.u32 %s2139_s30, 4  ;;  %s37_s12 = sshll.u32 %s2140_s11, 4  ;;  %s26_s10 = int_to_ptr.vmem [resolvable:$true] %s25_s10  ;;  %s38_s12 = int_to_ptr.vmem [resolvable:$true] %s37_s12 }
   0x4   :  { %s2081_s13 = scalar_lea.vmem %s26_s10, 128  ;;  %p2086_p1 = scmp.lt.s32.totalorder %s26_s10, %s26_s10 }
   0x5   :  { %p2082_p0 = scmp.ne.s32.totalorder %s26_s10, %s2081_s13  ;;  %p2087_p2 = scmp.lt.s32.totalorder %s2081_s13, %s2081_s13 }
   0x7   :  { %p2088_p3 = por %p2087_p2, %p2086_p1 }
   0x9   :  { %p2089_p4 = pnand %p2088_p3, %p2082_p0 }
   0xb   :  { %2092 = shalt.err (!%p2089_p4)
}
   0xc   :  { %28 = dma.hbm_to_vmem [thread:$0]  %s3171_s1, 128, %s26_s10, [#allocation4]  }
   0xd   :  { %s2101_s16 = scalar_lea.vmem %s38_s12, 128  ;;  %p2106_p6 = scmp.lt.s32.totalorder %s38_s12, %s38_s12 }
   0xe   :  { %p2102_p5 = scmp.ne.s32.totalorder %s38_s12, %s2101_s16  ;;  %p2107_p7 = scmp.lt.s32.totalorder %s2101_s16, %s2101_s16 }
  0x10   :  { %p2108_p8 = por %p2107_p7, %p2106_p6 }
  0x12   :  { %p2109_p9 = pnand %p2108_p8, %p2102_p5 }
  0x14   :  { %2112 = shalt.err (!%p2109_p9)
}
  0x15   :  { %40 = dma.hbm_to_vmem [thread:$0]  %s3173_s3, 128, %s38_s12, [#allocation7]  }
  0x16   :  { %2133 = dma.done.wait [#allocation4], 128  }
  0x17   :  { %2134 = vsyncadd [#allocation4], 4294967168 }
  0x18   :  { %2135 = dma.done.wait [#allocation7], 128  }
  0x19   :  { %2136 = vsyncadd [#allocation7], 4294967168  ;;  %vm61_vm0 = vcmask 277504   ;;  %v2141_v0 = vmov 0.0   ;;  %v314_v1 = vld [vmem:[%s3170_s0 + $0x10] sm:$0xff]  ;;  %v312_v2 = vld [vmem:[%s3170_s0] sm:$0xff]  ;;  %v63_v19 = vlaneseq }
  0x1a   :  { %57 = vst [vmem:[#allocation2] sm:$0xff] %v2141_v0  ;;  %62 = vst.msk [vmem:[#allocation2 + $0x20] sm:$0xff] %vm61_vm0, %v2141_v0  ;;  %759 = vmatprep.mubr.f32.mxu1 %v2141_v0  ;;  %688 = vmatprep.mubr.f32.mxu0 %v2141_v0  ;;  %s2142_s21 = smov 17   ;;  %v315_v3 = vld [vmem:[%s3170_s0 + $0x18] sm:$0xff]  ;;  %v313_v4 = vld [vmem:[%s3170_s0 + $0x8] sm:$0xff]  ;;  %vm3188_vm1 = vcmask 1047688  }
  0x1b   :  { %326 = vrot.lane.b32.xlu1 %v314_v1, %s2142_s21  ;;  %322 = vrot.lane.b32.xlu0 %v312_v2, %s2142_s21  ;;  %vm3182_vm2 = vcmask 138240   ;;  %s2143_s26 = smov 94   ;;  %s2144_s27 = smov 95   ;;  %v2151_v14 = vmov 0   ;;  %v317_v15 = vld [vmem:[%s3172_s2] sm:$0xff]  ;;  %v2321_v22 = vand.u32 127, %v63_v19 }
  0x1c   :  { %s2145_s28 = smov 96   ;;  %s2146_s29 = smov 110   ;;  %2067 = vset.pattern.permute.xlu0 %v2151_v14  ;;  %2068 = vset.pattern.permute.xlu1 %v2151_v14  ;;  %vm3180_vm8 = vcmask 769024   ;;  %vm3181_vm12 = vcmask 777216   ;;  %vm3184_vm0 = vcmask 785408  }
  0x1d   :  { %s2147_s30 = smov 111   ;;  %s2148_s10 = smov 112   ;;  %v65_v25 = vadd.s32 128, %v2321_v22  ;;  %v67_v28 = vadd.s32 384, %v2321_v22  ;;  %v2338_v35 = vadd.s32 256, %v2321_v22  ;;  %v72_v42 = vand.u32 15, %v2321_v22 }
  0x1e   :  { %s2149_s11 = smov 126   ;;  %s2150_s12 = smov 127  }
  0x1f   :  { %328 = vrot.lane.b32.xlu1 %v315_v3, %s2142_s21  ;;  %324 = vrot.lane.b32.xlu0 %v313_v4, %s2142_s21  ;;  %v79_v29 = vand.u32 15, %v65_v25  ;;  %v127_v30 = vand.u32 255, %v65_v25  ;;  %v93_v33 = vand.u32 15, %v67_v28  ;;  %v141_v34 = vand.u32 255, %v67_v28 }
  0x20   :  { %v86_v43 = vand.u32 15, %v2338_v35  ;;  %v2360_v46 = vadd.s32 1, %v72_v42  ;;  %v2404_v1 = vadd.s32 4294967295, %v72_v42  ;;  %v134_v42 = vand.u32 255, %v2338_v35 }
  0x21   :  { %v2340_v36 = vadd.s32 1, %v79_v29  ;;  %v2342_v37 = vadd.s32 16, %v127_v30  ;;  %v2348_v40 = vadd.s32 1, %v93_v33  ;;  %v2350_v41 = vadd.s32 16, %v141_v34 }
  0x22   :  { %v2362_v47 = vadd.s32 1, %v86_v43  ;;  %vm3201_vm10 = vcmp.lt.s32.totalorder %v2360_v46, 16  ;;  %v2390_v56 = vadd.s32 4294967295, %v79_v29  ;;  %v2396_v57 = vadd.s32 4294967295, %v93_v33 }
  0x23   :  { %vm3194_vm3 = vcmp.lt.s32.totalorder %v2340_v36, 16  ;;  %vm3187_vm4 = vcmp.lt.s32.totalorder %v2342_v37, 256  ;;  %vm3193_vm5 = vcmp.lt.s32.totalorder %v2348_v40, 16  ;;  %vm3183_vm6 = vcmp.lt.s32.totalorder %v2350_v41, 256 }
  0x24   :  { %vm2368_vm7 = vmand %vm3194_vm3, %vm3187_vm4  ;;  %vm3191_vm11 = vcmp.lt.s32.totalorder %v2362_v47, 16  ;;  %vm3189_vm13 = vcmp.ge.s32.totalorder %v2390_v56, 0  ;;  %vm3199_vm14 = vcmp.ge.s32.totalorder %v2396_v57, 0  ;;  %v2406_v2 = vadd.s32 4294967295, %v86_v43 }
  0x25   :  { %vm2376_vm9 = vmand %vm3193_vm5, %vm3183_vm6  ;;  %v120_v30 = vand.u32 255, %v2321_v22 }
  0x26   :  { %vm2417_vm15 = vmand %vm3189_vm13, %vm3187_vm4 }
  0x27   :  { %v2467_v22 = vadd.s32 4294967280, %v120_v30 }
  0x8d   :  { %v327_v5 = vpop.permute.xlu1 %326  ;;  %v323_v6 = vpop.permute.xlu0 %322 }
  0x8e   :  { %340 = vst.msk [vmem:[#allocation2] sm:$0xff] %vm3188_vm1, %v323_v6  ;;  %vm3192_vm1 = vcmask 1031168  }
  0x91   :  { %v329_v7 = vpop.permute.xlu1 %328  ;;  %v325_v10 = vpop.permute.xlu0 %324 }
  0x92   :  { %344 = vst.msk [vmem:[#allocation2 + $0x20] sm:$0xff] %vm3182_vm2, %v329_v7  ;;  %v2254_v11 = vsel %vm3182_vm2, %v323_v6, %v325_v10  ;;  %v2260_v12 = vsel %vm3182_vm2, %v327_v5, %v329_v7  ;;  %v2263_v13 = vsel %vm3182_vm2, %v325_v10, %v327_v5  ;;  %vm3200_vm2 = vcmp.ge.s32.totalorder %v2406_v2, 0 }
  0x95   :  { %v2231_v8 = vld [vmem:[#allocation2] sm:$0xff] }
  0x96   :  { %592 = vrot.lane.b32.xlu0 %v2231_v8, %s2143_s26 }
  0x99   :  { %v361_v9 = vld [vmem:[#allocation2 + $0x20] sm:$0xff] }
  0x9a   :  { %600 = vrot.lane.b32.xlu1 %v361_v9, %s2143_s26  ;;  %569 = vrot.lane.b32.xlu0 %v361_v9, %s2144_s27 }
  0x9e   :  { %561 = vrot.lane.b32.xlu1 %v2231_v8, %s2144_s27  ;;  %530 = vrot.lane.b32.xlu0 %v2231_v8, %s2145_s28 }
  0xa2   :  { %538 = vrot.lane.b32.xlu1 %v361_v9, %s2145_s28  ;;  %507 = vrot.lane.b32.xlu0 %v361_v9, %s2146_s29 }
  0xa6   :  { %499 = vrot.lane.b32.xlu1 %v2231_v8, %s2146_s29  ;;  %468 = vrot.lane.b32.xlu0 %v2231_v8, %s2147_s30 }
  0xaa   :  { %476 = vrot.lane.b32.xlu1 %v361_v9, %s2147_s30  ;;  %445 = vrot.lane.b32.xlu0 %v361_v9, %s2148_s10 }
  0xae   :  { %437 = vrot.lane.b32.xlu1 %v2231_v8, %s2148_s10  ;;  %406 = vrot.lane.b32.xlu0 %v2231_v8, %s2149_s11 }
  0xb2   :  { %414 = vrot.lane.b32.xlu1 %v361_v9, %s2149_s11  ;;  %594 = vrot.lane.b32.xlu0 %v2254_v11, %s2143_s26 }
  0xb6   :  { %596 = vrot.lane.b32.xlu1 %v2263_v13, %s2143_s26  ;;  %598 = vrot.lane.b32.xlu0 %v2260_v12, %s2143_s26 }
  0xba   :  { %563 = vrot.lane.b32.xlu1 %v2254_v11, %s2144_s27  ;;  %565 = vrot.lane.b32.xlu0 %v2263_v13, %s2144_s27 }
  0xbe   :  { %567 = vrot.lane.b32.xlu1 %v2260_v12, %s2144_s27  ;;  %532 = vrot.lane.b32.xlu0 %v2254_v11, %s2145_s28 }
  0xc2   :  { %534 = vrot.lane.b32.xlu1 %v2263_v13, %s2145_s28  ;;  %536 = vrot.lane.b32.xlu0 %v2260_v12, %s2145_s28 }
  0xc6   :  { %501 = vrot.lane.b32.xlu1 %v2254_v11, %s2146_s29  ;;  %503 = vrot.lane.b32.xlu0 %v2263_v13, %s2146_s29 }
  0xca   :  { %505 = vrot.lane.b32.xlu1 %v2260_v12, %s2146_s29  ;;  %470 = vrot.lane.b32.xlu0 %v2254_v11, %s2147_s30 }
  0xce   :  { %472 = vrot.lane.b32.xlu1 %v2263_v13, %s2147_s30  ;;  %474 = vrot.lane.b32.xlu0 %v2260_v12, %s2147_s30 }
  0xd2   :  { %439 = vrot.lane.b32.xlu1 %v2254_v11, %s2148_s10  ;;  %441 = vrot.lane.b32.xlu0 %v2263_v13, %s2148_s10 }
  0xd6   :  { %443 = vrot.lane.b32.xlu1 %v2260_v12, %s2148_s10  ;;  %408 = vrot.lane.b32.xlu0 %v2254_v11, %s2149_s11 }
  0xda   :  { %410 = vrot.lane.b32.xlu1 %v2263_v13, %s2149_s11  ;;  %412 = vrot.lane.b32.xlu0 %v2260_v12, %s2149_s11 }
  0xde   :  { %377 = vrot.lane.b32.xlu1 %v2254_v11, %s2150_s12  ;;  %379 = vrot.lane.b32.xlu0 %v2263_v13, %s2150_s12 }
  0xe2   :  { %381 = vrot.lane.b32.xlu1 %v2260_v12, %s2150_s12  ;;  %383 = vrot.lane.b32.xlu0 %v361_v9, %s2150_s12 }
  0xe6   :  { %375 = vrot.lane.b32.xlu1 %v2231_v8, %s2150_s12  ;;  %617 = vperm.xlu0 %2067, %v317_v15  }
 0x108   :  { %v593_v16 = vpop.permute.xlu0 %592 }
 0x10c   :  { %v601_v17 = vpop.permute.xlu1 %600  ;;  %v2317_v18 = vpop.permute.xlu0 %569 }
 0x110   :  { %v562_v20 = vpop.permute.xlu1 %561  ;;  %v2319_v21 = vpop.permute.xlu0 %530 }
 0x114   :  { %v2323_v23 = vpop.permute.xlu1 %538  ;;  %v2325_v24 = vpop.permute.xlu0 %507 }
 0x118   :  { %v2328_v26 = vpop.permute.xlu1 %499  ;;  %v2330_v27 = vpop.permute.xlu0 %468 }
 0x11c   :  { %v2333_v31 = vpop.permute.xlu1 %476  ;;  %v2335_v32 = vpop.permute.xlu0 %445 }
 0x120   :  { %v2344_v38 = vpop.permute.xlu1 %437  ;;  %v2346_v39 = vpop.permute.xlu0 %406 }
 0x124   :  { %v2356_v44 = vpop.permute.xlu1 %414  ;;  %v595_v45 = vpop.permute.xlu0 %594 }
 0x125   :  { %v603_v55 = vsel %vm3180_vm8, %v593_v16, %v595_v45 }
 0x128   :  { %v597_v50 = vpop.permute.xlu1 %596  ;;  %v599_v51 = vpop.permute.xlu0 %598 }
 0x129   :  { %v604_v52 = vsel %vm3180_vm8, %v595_v45, %v597_v50  ;;  %v606_v53 = vsel %vm3180_vm8, %v599_v51, %v601_v17  ;;  %v605_v54 = vsel %vm3180_vm8, %v597_v50, %v599_v51  ;;  %vm2425_vm8 = vmand %vm3199_vm14, %vm3183_vm6 }
 0x12a   :  { %1933 = vmatprep.subr.msk.mxu0 %vm2368_vm7, %v604_v52  ;;  %1948 = vmatprep.subr.msk.mxu1 %vm2376_vm9, %v606_v53  ;;  %v2472_v52 = vadd.s32 4294967280, %v134_v42 }
 0x12b   :  { %1934 = vmatpush1.msk.msra.mxu0 %vm3201_vm10, %v603_v55  ;;  %1949 = vmatpush1.msk.msra.mxu1 %vm3191_vm11, %v605_v54 }
 0x12c   :  { %v564_v58 = vpop.permute.xlu1 %563  ;;  %v566_v59 = vpop.permute.xlu0 %565 }
 0x12d   :  { %v573_v60 = vsel %vm3181_vm12, %v564_v58, %v566_v59  ;;  %v572_v61 = vsel %vm3181_vm12, %v562_v20, %v564_v58 }
 0x12e   :  { %1935 = vmatprep.subr.msk.mxu0 %vm3187_vm4, %v573_v60  ;;  %vm3195_vm4 = vcmp.ge.s32.totalorder %v2472_v52, 0 }
 0x12f   :  { %641 = vmatpush1.msra.mxu0 %v572_v61 }
 0x130   :  { %v568_v62 = vpop.permute.xlu1 %567  ;;  %v533_v63 = vpop.permute.xlu0 %532 }
 0x131   :  { %v575_v3 = vsel %vm3181_vm12, %v568_v62, %v2317_v18  ;;  %v574_v4 = vsel %vm3181_vm12, %v566_v59, %v568_v62  ;;  %vm3202_vm12 = vcmp.ge.s32.totalorder %v2404_v1, 0  ;;  %v541_v16 = vsel %vm3184_vm0, %v2319_v21, %v533_v63 }
 0x132   :  { %1950 = vmatprep.subr.msk.mxu1 %vm3183_vm6, %v575_v3  ;;  %vm3185_vm6 = vcmask 900096  }
 0x133   :  { %712 = vmatpush1.msra.mxu1 %v574_v4 }
 0x134   :  { %v535_v7 = vpop.permute.xlu1 %534  ;;  %v537_v9 = vpop.permute.xlu0 %536 }
 0x135   :  { %v542_v10 = vsel %vm3184_vm0, %v533_v63, %v535_v7  ;;  %v544_v14 = vsel %vm3184_vm0, %v537_v9, %v2323_v23  ;;  %v543_v15 = vsel %vm3184_vm0, %v535_v7, %v537_v9  ;;  %vm3186_vm0 = vcmask 908288  }
 0x136   :  { %1936 = vmatprep.subr.msk.mxu0 %vm2417_vm15, %v542_v10  ;;  %1951 = vmatprep.subr.msk.mxu1 %vm2425_vm8, %v544_v14  ;;  %v316_v14 = vld [vmem:[#allocation3] sm:$0xff] }
 0x137   :  { %1937 = vmatpush1.msk.msra.mxu0 %vm3202_vm12, %v541_v16  ;;  %1952 = vmatpush1.msk.msra.mxu1 %vm3200_vm2, %v543_v15 }
 0x138   :  { %v502_v17 = vpop.permute.xlu1 %501  ;;  %v504_v18 = vpop.permute.xlu0 %503 }
 0x139   :  { %v511_v19 = vsel %vm3185_vm6, %v502_v17, %v504_v18  ;;  %v510_v20 = vsel %vm3185_vm6, %v2328_v26, %v502_v17 }
 0x13a   :  { %1938 = vmatprep.subr.msk.mxu0 %vm3194_vm3, %v511_v19 }
 0x13b   :  { %1939 = vmatpush1.msk.msra.mxu0 %vm3201_vm10, %v510_v20 }
 0x13c   :  { %v506_v21 = vpop.permute.xlu1 %505  ;;  %v471_v23 = vpop.permute.xlu0 %470 }
 0x13d   :  { %v513_v25 = vsel %vm3185_vm6, %v506_v21, %v2325_v24  ;;  %v512_v28 = vsel %vm3185_vm6, %v504_v18, %v506_v21  ;;  %v479_v43 = vsel %vm3186_vm0, %v2330_v27, %v471_v23  ;;  %vm3190_vm6 = vcmask 916480  }
 0x13e   :  { %1953 = vmatprep.subr.msk.mxu1 %vm3193_vm5, %v513_v25 }
 0x13f   :  { %1954 = vmatpush1.msk.msra.mxu1 %vm3191_vm11, %v512_v28 }
 0x140   :  { %v473_v26 = vpop.permute.xlu1 %472  ;;  %v475_v29 = vpop.permute.xlu0 %474 }
 0x141   :  { %v480_v33 = vsel %vm3186_vm0, %v471_v23, %v473_v26  ;;  %v482_v34 = vsel %vm3186_vm0, %v475_v29, %v2333_v31  ;;  %v481_v24 = vsel %vm3186_vm0, %v473_v26, %v475_v29  ;;  %vm3196_vm0 = vcmp.ge.s32.totalorder %v2467_v22, 0 }
 0x142   :  { %646 = vmatprep.subr.mxu0 %v480_v33  ;;  %717 = vmatprep.subr.mxu1 %v482_v34 }
 0x143   :  { %647 = vmatpush1.msra.mxu0 %v479_v43  ;;  %718 = vmatpush1.msra.mxu1 %v481_v24 }
 0x144   :  { %v440_v45 = vpop.permute.xlu1 %439  ;;  %v442_v50 = vpop.permute.xlu0 %441 }
 0x145   :  { %v449_v51 = vsel %vm3190_vm6, %v440_v45, %v442_v50  ;;  %v448_v31 = vsel %vm3190_vm6, %v2344_v38, %v440_v45 }
 0x146   :  { %1940 = vmatprep.subr.msk.mxu0 %vm3189_vm13, %v449_v51  ;;  %vm2491_vm13 = vmand %vm3201_vm10, %vm3196_vm0 }
 0x147   :  { %1941 = vmatpush1.msk.msra.mxu0 %vm3202_vm12, %v448_v31 }
 0x148   :  { %v444_v27 = vpop.permute.xlu1 %443  ;;  %v409_v35 = vpop.permute.xlu0 %408 }
 0x149   :  { %v451_v53 = vsel %vm3190_vm6, %v444_v27, %v2335_v32  ;;  %v450_v54 = vsel %vm3190_vm6, %v442_v50, %v444_v27  ;;  %vm2499_vm6 = vmand %vm3191_vm11, %vm3195_vm4  ;;  %v417_v62 = vsel %vm3192_vm1, %v2346_v39, %v409_v35  ;;  %vm3198_vm11 = vcmask 1039360   ;;  %v2070_v39 = vld [vmem:[%s3170_s0 + $0x8] sm:$0xff] }
 0x14a   :  { %1955 = vmatprep.subr.msk.mxu1 %vm3199_vm14, %v451_v53 }
 0x14b   :  { %1956 = vmatpush1.msk.msra.mxu1 %vm3200_vm2, %v450_v54  ;;  %v779_v54 = vld [vmem:[%s3174_s4] sm:$0xff] }
 0x14c   :  { %v411_v32 = vpop.permute.xlu1 %410  ;;  %v413_v55 = vpop.permute.xlu0 %412 }
 0x14d   :  { %v418_v59 = vsel %vm3192_vm1, %v409_v35, %v411_v32  ;;  %v420_v60 = vsel %vm3192_vm1, %v413_v55, %v2356_v44  ;;  %v419_v61 = vsel %vm3192_vm1, %v411_v32, %v413_v55  ;;  %vm2524_vm1 = vmand %vm3200_vm2, %vm3195_vm4 }
 0x14e   :  { %1942 = vmatprep.subr.msk.mxu0 %vm3194_vm3, %v418_v59  ;;  %1957 = vmatprep.subr.msk.mxu1 %vm3193_vm5, %v420_v60  ;;  %vm3197_vm5 = vcmask 588800   ;;  %vm2541_vm3 = vmand %vm3202_vm12, %vm3196_vm0 }
 0x14f   :  { %1943 = vmatpush1.msk.msra.mxu0 %vm2491_vm13, %v417_v62  ;;  %1958 = vmatpush1.msk.msra.mxu1 %vm2499_vm6, %v419_v61 }
 0x150   :  { %v378_v63 = vpop.permute.xlu1 %377  ;;  %v380_v44 = vpop.permute.xlu0 %379 }
 0x151   :  { %v387_v3 = vsel %vm3198_vm11, %v378_v63, %v380_v44 }
 0x152   :  { %652 = vmatprep.subr.mxu0 %v387_v3 }
 0x154   :  { %v382_v4 = vpop.permute.xlu1 %381  ;;  %v384_v7 = vpop.permute.xlu0 %383 }
 0x155   :  { %v389_v9 = vsel %vm3198_vm11, %v382_v4, %v384_v7  ;;  %v388_v10 = vsel %vm3198_vm11, %v380_v44, %v382_v4 }
 0x156   :  { %723 = vmatprep.subr.mxu1 %v389_v9 }
 0x157   :  { %1959 = vmatpush1.msk.msra.mxu1 %vm3195_vm4, %v388_v10  ;;  %vm3219_vm4 = vcmp.ge.s32.totalorder %v2390_v56, 0 }
 0x158   :  { %v376_v15 = vpop.permute.xlu1 %375  ;;  %1960 = vmatprep.subr.msk.mxu1 %vm3199_vm14, %v2260_v12  ;;  %vm3221_vm14 = vcmask 138240  }
 0x159   :  { %v386_v16 = vsel %vm3198_vm11, %v376_v15, %v378_v63  ;;  %1961 = vmatpush1.msk.msra.mxu1 %vm2524_vm1, %v2263_v13 }
 0x15a   :  { %1944 = vmatpush1.msk.msra.mxu0 %vm3196_vm0, %v386_v16  ;;  %1962 = vmatmul.mubr.msk.f32.vlgmr.msra.gmra.mxu1 %vm3197_vm5, %v316_v14 }
 0x15b   :  { %1945 = vmatprep.subr.msk.mxu0 %vm3219_vm4, %v2254_v11  ;;  %1138 = vmatprep.mubr.f32.mxu1 %v2141_v0 }
 0x15c   :  { %1946 = vmatpush1.msk.msra.mxu0 %vm2541_vm3, %v2231_v8 }
 0x15d   :  { %1947 = vmatmul.mubr.msk.f32.vlgmr.msra.gmra.mxu0 %vm3197_vm5, %v316_v14 }
 0x15e   :  { %1067 = vmatprep.mubr.f32.mxu0 %v2141_v0 }
 0x161   :  { %v618_v12 = vpop.permute.xlu0 %617 }
 0x21a   :  { %v761_v13 = vpop.f32.mrf.mxu1 }
 0x21b   :  { %v762_v18 = vadd.f32 %v761_v13, %v618_v12 }
 0x21c   :  { %v763_v23 = vpop.f32.mrf.mxu1 }
 0x21d   :  { %v690_v19 = vpop.f32.mrf.mxu0  ;;  %vm768_vm0 = vcmp.ge.f32.partialorder %v762_v18, 0.0  ;;  %v772_v20 = vmul.f32 0.01, %v762_v18  ;;  %v764_v8 = vadd.f32 %v763_v23, %v618_v12 }
 0x21e   :  { %v691_v21 = vadd.f32 %v690_v19, %v618_v12 }
 0x21f   :  { %v692_v25 = vpop.f32.mrf.mxu0  ;;  %v776_v11 = vsel %vm768_vm0, %v762_v18, %v772_v20  ;;  %v773_v33 = vmul.f32 0.01, %v764_v8  ;;  %vm769_vm11 = vcmp.ge.f32.partialorder %v764_v8, 0.0  ;;  %vm3220_vm0 = vcmask 1047688  }
 0x220   :  { %v770_v28 = vmul.f32 0.01, %v691_v21  ;;  %v693_v26 = vadd.f32 %v692_v25, %v618_v12  ;;  %788 = vrot.lane.b32.xlu0 %v776_v11, %s2142_s21  ;;  %vm766_vm4 = vcmp.ge.f32.partialorder %v691_v21, 0.0 }
 0x221   :  { %v777_v24 = vsel %vm769_vm11, %v764_v8, %v773_v33 }
 0x222   :  { %v771_v29 = vmul.f32 0.01, %v693_v26  ;;  %v774_v30 = vsel %vm766_vm4, %v691_v21, %v770_v28  ;;  %vm767_vm5 = vcmp.ge.f32.partialorder %v693_v26, 0.0  ;;  %vm3225_vm4 = vcmask 769024  }
 0x223   :  { %784 = vrot.lane.b32.xlu1 %v774_v30, %s2142_s21 }
 0x224   :  { %v775_v34 = vsel %vm767_vm5, %v693_v26, %v771_v29  ;;  %vm3222_vm5 = vmmov %vm3221_vm14 }
 0x225   :  { %vm3223_vm11 = vmmov %vm3222_vm5 }
 0x227   :  { %786 = vrot.lane.b32.xlu1 %v775_v34, %s2142_s21 }
 0x22b   :  { %790 = vrot.lane.b32.xlu1 %v777_v24, %s2142_s21 }
 0x292   :  { %v789_v31 = vpop.permute.xlu0 %788 }
 0x295   :  { %v785_v42 = vpop.permute.xlu1 %784 }
 0x296   :  { %800 = vst.msk [vmem:[#allocation2] sm:$0xff] %vm3220_vm0, %v785_v42  ;;  %vm3226_vm0 = vmmov %vm3225_vm4 }
 0x299   :  { %v787_v43 = vpop.permute.xlu1 %786 }
 0x29a   :  { %v2587_v27 = vsel %vm3222_vm5, %v785_v42, %v787_v43  ;;  %v2590_v35 = vsel %vm3223_vm11, %v787_v43, %v789_v31  ;;  %vm3228_vm11 = vmmov %vm3226_vm0 }
 0x29d   :  { %v791_v45 = vpop.permute.xlu1 %790  ;;  %v2562_v50 = vld [vmem:[#allocation2] sm:$0xff] }
 0x29e   :  { %804 = vst.msk [vmem:[#allocation2 + $0x20] sm:$0xff] %vm3221_vm14, %v791_v45  ;;  %951 = vrot.lane.b32.xlu1 %v2562_v50, %s2144_s27  ;;  %973 = vrot.lane.b32.xlu0 %v2562_v50, %s2143_s26  ;;  %vm3224_vm14 = vmmov %vm3222_vm5 }
 0x29f   :  { %v2597_v53 = vsel %vm3224_vm14, %v789_v31, %v791_v45  ;;  %vm3227_vm5 = vmmov %vm3226_vm0  ;;  %vm3229_vm14 = vcmp.lt.s32.totalorder %v2362_v47, 16 }
 0x2a2   :  { %907 = vrot.lane.b32.xlu1 %v2562_v50, %s2146_s29  ;;  %929 = vrot.lane.b32.xlu0 %v2562_v50, %s2145_s28 }
 0x2a5   :  { %v813_v51 = vld [vmem:[#allocation2 + $0x20] sm:$0xff] }
 0x2a6   :  { %863 = vrot.lane.b32.xlu1 %v2562_v50, %s2148_s10  ;;  %885 = vrot.lane.b32.xlu0 %v2562_v50, %s2147_s30 }
 0x2aa   :  { %841 = vrot.lane.b32.xlu0 %v2562_v50, %s2149_s11  ;;  %981 = vrot.lane.b32.xlu1 %v813_v51, %s2143_s26 }
 0x2ae   :  { %959 = vrot.lane.b32.xlu0 %v813_v51, %s2144_s27  ;;  %937 = vrot.lane.b32.xlu1 %v813_v51, %s2145_s28 }
 0x2b2   :  { %915 = vrot.lane.b32.xlu0 %v813_v51, %s2146_s29  ;;  %893 = vrot.lane.b32.xlu1 %v813_v51, %s2147_s30 }
 0x2b6   :  { %871 = vrot.lane.b32.xlu0 %v813_v51, %s2148_s10  ;;  %849 = vrot.lane.b32.xlu1 %v813_v51, %s2149_s11 }
 0x2ba   :  { %975 = vrot.lane.b32.xlu0 %v2587_v27, %s2143_s26  ;;  %977 = vrot.lane.b32.xlu1 %v2590_v35, %s2143_s26 }
 0x2be   :  { %953 = vrot.lane.b32.xlu1 %v2587_v27, %s2144_s27  ;;  %979 = vrot.lane.b32.xlu0 %v2597_v53, %s2143_s26 }
 0x2c2   :  { %957 = vrot.lane.b32.xlu1 %v2597_v53, %s2144_s27  ;;  %955 = vrot.lane.b32.xlu0 %v2590_v35, %s2144_s27 }
 0x2c6   :  { %933 = vrot.lane.b32.xlu1 %v2590_v35, %s2145_s28  ;;  %931 = vrot.lane.b32.xlu0 %v2587_v27, %s2145_s28 }
 0x2ca   :  { %909 = vrot.lane.b32.xlu1 %v2587_v27, %s2146_s29  ;;  %935 = vrot.lane.b32.xlu0 %v2597_v53, %s2145_s28 }
 0x2ce   :  { %913 = vrot.lane.b32.xlu1 %v2597_v53, %s2146_s29  ;;  %911 = vrot.lane.b32.xlu0 %v2590_v35, %s2146_s29 }
 0x2d2   :  { %889 = vrot.lane.b32.xlu1 %v2590_v35, %s2147_s30  ;;  %887 = vrot.lane.b32.xlu0 %v2587_v27, %s2147_s30 }
 0x2d6   :  { %865 = vrot.lane.b32.xlu1 %v2587_v27, %s2148_s10  ;;  %891 = vrot.lane.b32.xlu0 %v2597_v53, %s2147_s30 }
 0x2da   :  { %869 = vrot.lane.b32.xlu1 %v2597_v53, %s2148_s10  ;;  %867 = vrot.lane.b32.xlu0 %v2590_v35, %s2148_s10 }
 0x2de   :  { %845 = vrot.lane.b32.xlu1 %v2590_v35, %s2149_s11  ;;  %843 = vrot.lane.b32.xlu0 %v2587_v27, %s2149_s11 }
 0x2e2   :  { %821 = vrot.lane.b32.xlu1 %v2587_v27, %s2150_s12  ;;  %847 = vrot.lane.b32.xlu0 %v2597_v53, %s2149_s11 }
 0x2e6   :  { %825 = vrot.lane.b32.xlu1 %v2597_v53, %s2150_s12  ;;  %823 = vrot.lane.b32.xlu0 %v2590_v35, %s2150_s12 }
 0x2ea   :  { %819 = vrot.lane.b32.xlu1 %v2562_v50, %s2150_s12  ;;  %827 = vrot.lane.b32.xlu0 %v813_v51, %s2150_s12 }
 0x2ee   :  { %997 = vperm.xlu0 %2067, %v779_v54  }
 0x310   :  { %v974_v32 = vpop.permute.xlu0 %973  ;;  %v952_v55 = vpop.permute.xlu1 %951 }
 0x314   :  { %v930_v59 = vpop.permute.xlu0 %929  ;;  %v908_v60 = vpop.permute.xlu1 %907 }
 0x318   :  { %v886_v61 = vpop.permute.xlu0 %885  ;;  %v2649_v62 = vpop.permute.xlu1 %863 }
 0x31c   :  { %v2651_v63 = vpop.permute.xlu0 %841  ;;  %v982_v44 = vpop.permute.xlu1 %981 }
 0x320   :  { %v960_v3 = vpop.permute.xlu0 %959  ;;  %v938_v4 = vpop.permute.xlu1 %937 }
 0x324   :  { %v916_v7 = vpop.permute.xlu0 %915  ;;  %v894_v9 = vpop.permute.xlu1 %893 }
 0x328   :  { %v2653_v10 = vpop.permute.xlu0 %871  ;;  %v2655_v14 = vpop.permute.xlu1 %849 }
 0x32c   :  { %v976_v15 = vpop.permute.xlu0 %975  ;;  %v978_v16 = vpop.permute.xlu1 %977 }
 0x32d   :  { %v983_v12 = vsel %vm3225_vm4, %v974_v32, %v976_v15  ;;  %v984_v13 = vsel %vm3226_vm0, %v976_v15, %v978_v16  ;;  %vm3230_vm4 = vcmask 777216  }
 0x32e   :  { %1963 = vmatprep.subr.msk.mxu0 %vm2368_vm7, %v984_v13  ;;  %vm3231_vm0 = vmmov %vm3230_vm4 }
 0x32f   :  { %1964 = vmatpush1.msk.msra.mxu0 %vm3201_vm10, %v983_v12  ;;  %vm3232_vm2 = vmmov %vm3231_vm0  ;;  %vm3233_vm10 = vcmp.lt.s32.totalorder %v2342_v37, 256 }
 0x330   :  { %v980_v18 = vpop.permute.xlu0 %979  ;;  %v954_v19 = vpop.permute.xlu1 %953 }
 0x331   :  { %v985_v20 = vsel %vm3227_vm5, %v978_v16, %v980_v18  ;;  %v986_v21 = vsel %vm3228_vm11, %v980_v18, %v982_v44  ;;  %vm3234_vm5 = vcmp.lt.s32.totalorder %v2350_v41, 256  ;;  %vm3235_vm11 = vmmov %vm3231_vm0 }
 0x332   :  { %1978 = vmatprep.subr.msk.mxu1 %vm2376_vm9, %v986_v21  ;;  %v961_v8 = vsel %vm3235_vm11, %v952_v55, %v954_v19 }
 0x333   :  { %1979 = vmatpush1.msk.msra.mxu1 %vm3229_vm14, %v985_v20  ;;  %vm3236_vm14 = vcmask 785408  }
 0x334   :  { %v956_v23 = vpop.permute.xlu0 %955  ;;  %v958_v25 = vpop.permute.xlu1 %957  ;;  %vm3237_vm12 = vmmov %vm3236_vm14 }
 0x335   :  { %v962_v11 = vsel %vm3230_vm4, %v954_v19, %v956_v23  ;;  %v964_v28 = vsel %vm3231_vm0, %v958_v25, %v960_v3  ;;  %v963_v26 = vsel %vm3232_vm2, %v956_v23, %v958_v25  ;;  %vm3238_vm2 = vcmp.ge.s32.totalorder %v2404_v1, 0 }
 0x336   :  { %1965 = vmatprep.subr.msk.mxu0 %vm3233_vm10, %v962_v11  ;;  %1980 = vmatprep.subr.msk.mxu1 %vm3234_vm5, %v964_v28  ;;  %vm3239_vm10 = vmmov %vm3237_vm12  ;;  %vm3241_vm0 = vcmp.ge.s32.totalorder %v2406_v2, 0 }
 0x337   :  { %1020 = vmatpush1.msra.mxu0 %v961_v8  ;;  %1091 = vmatpush1.msra.mxu1 %v963_v26  ;;  %vm3240_vm4 = vmmov %vm3239_vm10 }
 0x338   :  { %v932_v29 = vpop.permute.xlu0 %931  ;;  %v934_v30 = vpop.permute.xlu1 %933 }
 0x339   :  { %v939_v33 = vsel %vm3236_vm14, %v930_v59, %v932_v29  ;;  %v940_v34 = vsel %vm3237_vm12, %v932_v29, %v934_v30  ;;  %vm3242_vm12 = vcmask 900096  }
 0x33a   :  { %1966 = vmatprep.subr.msk.mxu0 %vm2417_vm15, %v940_v34  ;;  %vm3243_vm5 = vmmov %vm3242_vm12 }
 0x33b   :  { %1967 = vmatpush1.msk.msra.mxu0 %vm3238_vm2, %v939_v33  ;;  %vm3244_vm11 = vmmov %vm3243_vm5  ;;  %vm3246_vm2 = vcmp.lt.s32.totalorder %v2340_v36, 16 }
 0x33c   :  { %v936_v24 = vpop.permute.xlu0 %935  ;;  %v910_v42 = vpop.permute.xlu1 %909  ;;  %vm3245_vm14 = vmmov %vm3243_vm5 }
 0x33d   :  { %v941_v43 = vsel %vm3239_vm10, %v934_v30, %v936_v24  ;;  %v942_v45 = vsel %vm3240_vm4, %v936_v24, %v938_v4  ;;  %v917_v59 = vsel %vm3245_vm14, %v908_v60, %v910_v42  ;;  %vm3247_vm10 = vcmp.lt.s32.totalorder %v2348_v40, 16 }
 0x33e   :  { %1981 = vmatprep.subr.msk.mxu1 %vm2425_vm8, %v942_v45  ;;  %vm3248_vm4 = vcmp.lt.s32.totalorder %v2360_v46, 16 }
 0x33f   :  { %1982 = vmatpush1.msk.msra.mxu1 %vm3241_vm0, %v941_v43  ;;  %vm3249_vm0 = vcmp.lt.s32.totalorder %v2362_v47, 16 }
 0x340   :  { %v912_v51 = vpop.permute.xlu0 %911  ;;  %v914_v31 = vpop.permute.xlu1 %913 }
 0x341   :  { %v919_v54 = vsel %vm3242_vm12, %v912_v51, %v914_v31  ;;  %v918_v32 = vsel %vm3243_vm5, %v910_v42, %v912_v51  ;;  %v920_v55 = vsel %vm3244_vm11, %v914_v31, %v916_v7  ;;  %vm3250_vm12 = vcmask 908288  }
 0x342   :  { %1968 = vmatprep.subr.msk.mxu0 %vm3246_vm2, %v918_v32  ;;  %1983 = vmatprep.subr.msk.mxu1 %vm3247_vm10, %v920_v55  ;;  %vm3251_vm5 = vmmov %vm3250_vm12  ;;  %vm3254_vm2 = vcmask 916480  }
 0x343   :  { %1969 = vmatpush1.msk.msra.mxu0 %vm3248_vm4, %v917_v59  ;;  %1984 = vmatpush1.msk.msra.mxu1 %vm3249_vm0, %v919_v54  ;;  %vm3252_vm11 = vmmov %vm3251_vm5 }
 0x344   :  { %v888_v44 = vpop.permute.xlu0 %887  ;;  %v890_v3 = vpop.permute.xlu1 %889  ;;  %vm3253_vm14 = vmmov %vm3251_vm5 }
 0x345   :  { %v896_v4 = vsel %vm3250_vm12, %v888_v44, %v890_v3  ;;  %v895_v7 = vsel %vm3251_vm5, %v886_v61, %v888_v44  ;;  %vm3255_vm10 = vmmov %vm3254_vm2  ;;  %vm3258_vm12 = vcmp.ge.s32.totalorder %v2390_v56, 0  ;;  %vm3259_vm5 = vcmp.ge.s32.totalorder %v2396_v57, 0 }
 0x346   :  { %1025 = vmatprep.subr.mxu0 %v896_v4  ;;  %vm3256_vm4 = vmmov %vm3254_vm2 }
 0x347   :  { %1026 = vmatpush1.msra.mxu0 %v895_v7  ;;  %vm3257_vm0 = vmmov %vm3254_vm2 }
 0x348   :  { %v892_v60 = vpop.permute.xlu0 %891  ;;  %v866_v15 = vpop.permute.xlu1 %865 }
 0x349   :  { %v898_v16 = vsel %vm3252_vm11, %v892_v60, %v894_v9  ;;  %v897_v12 = vsel %vm3253_vm14, %v890_v3, %v892_v60  ;;  %v873_v61 = vsel %vm3257_vm0, %v2649_v62, %v866_v15  ;;  %vm3260_vm11 = vcmp.ge.s32.totalorder %v2404_v1, 0 }
 0x34a   :  { %1096 = vmatprep.subr.mxu1 %v898_v16  ;;  %vm3261_vm14 = vcmp.ge.s32.totalorder %v2406_v2, 0 }
 0x34b   :  { %1097 = vmatpush1.msra.mxu1 %v897_v12 }
 0x34c   :  { %v868_v13 = vpop.permute.xlu0 %867  ;;  %v870_v18 = vpop.permute.xlu1 %869 }
 0x34d   :  { %v875_v19 = vsel %vm3254_vm2, %v868_v13, %v870_v18  ;;  %v874_v20 = vsel %vm3255_vm10, %v866_v15, %v868_v13  ;;  %v876_v21 = vsel %vm3256_vm4, %v870_v18, %v2653_v10  ;;  %vm3262_vm2 = vcmask 1031168  }
 0x34e   :  { %1970 = vmatprep.subr.msk.mxu0 %vm3258_vm12, %v874_v20  ;;  %1985 = vmatprep.subr.msk.mxu1 %vm3259_vm5, %v876_v21  ;;  %vm3263_vm10 = vmmov %vm3262_vm2  ;;  %vm3264_vm4 = vcmp.lt.s32.totalorder %v2340_v36, 16  ;;  %vm3267_vm5 = vcmp.lt.s32.totalorder %v2348_v40, 16 }
 0x34f   :  { %1971 = vmatpush1.msk.msra.mxu0 %vm3260_vm11, %v873_v61  ;;  %1986 = vmatpush1.msk.msra.mxu1 %vm3261_vm14, %v875_v19  ;;  %vm3265_vm0 = vmmov %vm3262_vm2  ;;  %vm3268_vm11 = vcmask 1039360  }
 0x350   :  { %v844_v9 = vpop.permute.xlu0 %843  ;;  %v846_v23 = vpop.permute.xlu1 %845  ;;  %vm3266_vm12 = vmmov %vm3265_vm0 }
 0x351   :  { %v851_v10 = vsel %vm3262_vm2, %v2651_v63, %v844_v9  ;;  %v852_v25 = vsel %vm3263_vm10, %v844_v9, %v846_v23  ;;  %vm3269_vm14 = vmmov %vm3268_vm11  ;;  %v1158_v9 = vld [vmem:[%s3176_s6] sm:$0xff] }
 0x352   :  { %1972 = vmatprep.subr.msk.mxu0 %vm3264_vm4, %v852_v25  ;;  %vm3270_vm2 = vmmov %vm3268_vm11  ;;  %vm3272_vm4 = vcmp.ge.s32.totalorder %v2467_v22, 0 }
 0x353   :  { %1973 = vmatpush1.msk.msra.mxu0 %vm2491_vm13, %v851_v10  ;;  %vm3271_vm10 = vmmov %vm3270_vm2 }
 0x354   :  { %v848_v62 = vpop.permute.xlu0 %847  ;;  %v822_v11 = vpop.permute.xlu1 %821 }
 0x355   :  { %v853_v28 = vsel %vm3265_vm0, %v846_v23, %v848_v62  ;;  %v854_v26 = vsel %vm3266_vm12, %v848_v62, %v2655_v14  ;;  %v778_v14 = vld [vmem:[#allocation6] sm:$0xff]  ;;  %vm3273_vm0 = vcmp.ge.s32.totalorder %v2390_v56, 0  ;;  %vm3274_vm12 = vcmp.ge.s32.totalorder %v2472_v52, 0 }
 0x356   :  { %1987 = vmatprep.subr.msk.mxu1 %vm3267_vm5, %v854_v26  ;;  %vm3275_vm5 = vcmp.ge.s32.totalorder %v2396_v57, 0 }
 0x357   :  { %1988 = vmatpush1.msk.msra.mxu1 %vm2499_vm6, %v853_v28 }
 0x358   :  { %v824_v63 = vpop.permute.xlu0 %823  ;;  %v826_v8 = vpop.permute.xlu1 %825 }
 0x359   :  { %v830_v29 = vsel %vm3268_vm11, %v822_v11, %v824_v63  ;;  %v831_v42 = vsel %vm3271_vm10, %v824_v63, %v826_v8  ;;  %vm3276_vm11 = vcmask 588800  }
 0x35a   :  { %1031 = vmatprep.subr.mxu0 %v830_v29 }
 0x35c   :  { %v828_v30 = vpop.permute.xlu0 %827  ;;  %v820_v33 = vpop.permute.xlu1 %819 }
 0x35d   :  { %v829_v34 = vsel %vm3269_vm14, %v820_v33, %v822_v11  ;;  %v832_v24 = vsel %vm3270_vm2, %v826_v8, %v828_v30  ;;  %vm3277_vm14 = vmmov %vm3276_vm11 }
 0x35e   :  { %1974 = vmatpush1.msk.msra.mxu0 %vm3272_vm4, %v829_v34  ;;  %1102 = vmatprep.subr.mxu1 %v832_v24 }
 0x35f   :  { %1975 = vmatprep.subr.msk.mxu0 %vm3273_vm0, %v2587_v27  ;;  %1989 = vmatpush1.msk.msra.mxu1 %vm3274_vm12, %v831_v42  ;;  %vm3278_vm12 = vcmask 1047688  }
 0x360   :  { %1976 = vmatpush1.msk.msra.mxu0 %vm2541_vm3, %v2562_v50  ;;  %1990 = vmatprep.subr.msk.mxu1 %vm3275_vm5, %v2597_v53  ;;  %vm3279_vm5 = vcmask 138240  }
 0x361   :  { %1977 = vmatmul.mubr.msk.f32.vlgmr.msra.gmra.mxu0 %vm3276_vm11, %v778_v14  ;;  %1991 = vmatpush1.msk.msra.mxu1 %vm2524_vm1, %v2590_v35  ;;  %vm3280_vm11 = vmmov %vm3279_vm5 }
 0x362   :  { %1992 = vmatmul.mubr.msk.f32.vlgmr.msra.gmra.mxu1 %vm3277_vm14, %v778_v14  ;;  %1446 = vmatprep.mubr.f32.mxu0 %v2141_v0  ;;  %vm3281_vm14 = vmmov %vm3279_vm5 }
 0x363   :  { %1517 = vmatprep.mubr.f32.mxu1 %v2141_v0 }
 0x369   :  { %v998_v27 = vpop.permute.xlu0 %997 }
 0x421   :  { %v1069_v43 = vpop.f32.mrf.mxu0 }
 0x422   :  { %v1070_v45 = vadd.f32 %v1069_v43, %v998_v27  ;;  %v1140_v50 = vpop.f32.mrf.mxu1 }
 0x423   :  { %v1141_v51 = vadd.f32 %v1140_v50, %v998_v27  ;;  %v1071_v31 = vpop.f32.mrf.mxu0 }
 0x424   :  { %v1149_v54 = vmul.f32 0.01, %v1070_v45  ;;  %v1072_v53 = vadd.f32 %v1071_v31, %v998_v27  ;;  %v1142_v32 = vpop.f32.mrf.mxu1  ;;  %vm1145_vm2 = vcmp.ge.f32.partialorder %v1070_v45, 0.0 }
 0x425   :  { %v1143_v55 = vadd.f32 %v1142_v32, %v998_v27  ;;  %v1151_v59 = vmul.f32 0.01, %v1141_v51  ;;  %vm1147_vm4 = vcmp.ge.f32.partialorder %v1141_v51, 0.0 }
 0x426   :  { %v1150_v44 = vmul.f32 0.01, %v1072_v53  ;;  %v1153_v35 = vsel %vm1145_vm2, %v1070_v45, %v1149_v54  ;;  %vm1146_vm10 = vcmp.ge.f32.partialorder %v1072_v53, 0.0  ;;  %vm3282_vm2 = vmmov %vm3279_vm5 }
 0x427   :  { %1163 = vrot.lane.b32.xlu1 %v1153_v35, %s2142_s21  ;;  %v1152_v3 = vmul.f32 0.01, %v1143_v55  ;;  %vm1148_vm0 = vcmp.ge.f32.partialorder %v1143_v55, 0.0  ;;  %v1155_v7 = vsel %vm1147_vm4, %v1141_v51, %v1151_v59 }
 0x428   :  { %v1154_v4 = vsel %vm1146_vm10, %v1072_v53, %v1150_v44  ;;  %vm3283_vm10 = vcmask 769024  }
 0x429   :  { %1165 = vrot.lane.b32.xlu0 %v1154_v4, %s2142_s21  ;;  %v1156_v60 = vsel %vm1148_vm0, %v1143_v55, %v1152_v3  ;;  %vm3284_vm4 = vmmov %vm3283_vm10  ;;  %vm3285_vm0 = vcmp.lt.s32.totalorder %v2360_v46, 16 }
 0x42b   :  { %1167 = vrot.lane.b32.xlu1 %v1155_v7, %s2142_s21 }
 0x42d   :  { %1169 = vrot.lane.b32.xlu0 %v1156_v60, %s2142_s21 }
 0x499   :  { %v1164_v15 = vpop.permute.xlu1 %1163 }
 0x49a   :  { %1179 = vst.msk [vmem:[#allocation2] sm:$0xff] %vm3278_vm12, %v1164_v15  ;;  %vm3286_vm12 = vmmov %vm3284_vm4 }
 0x49b   :  { %v1166_v16 = vpop.permute.xlu0 %1165 }
 0x49c   :  { %v2787_v20 = vsel %vm3280_vm11, %v1164_v15, %v1166_v16  ;;  %vm3288_vm11 = vcmp.lt.s32.totalorder %v2362_v47, 16 }
 0x49d   :  { %v1168_v19 = vpop.permute.xlu1 %1167 }
 0x49e   :  { %v2790_v21 = vsel %vm3281_vm14, %v1166_v16, %v1168_v19  ;;  %vm3289_vm14 = vcmask 777216  }
 0x49f   :  { %v1170_v12 = vpop.permute.xlu0 %1169 }
 0x4a0   :  { %1183 = vst.msk [vmem:[#allocation2 + $0x20] sm:$0xff] %vm3279_vm5, %v1170_v12  ;;  %v2797_v61 = vsel %vm3282_vm2, %v1168_v19, %v1170_v12  ;;  %vm3287_vm5 = vmmov %vm3284_vm4 }
 0x4a1   :  { %v2763_v13 = vld [vmem:[#allocation2] sm:$0xff]  ;;  %vm3290_vm2 = vmmov %vm3289_vm14 }
 0x4a2   :  { %1330 = vrot.lane.b32.xlu0 %v2763_v13, %s2144_s27  ;;  %1352 = vrot.lane.b32.xlu1 %v2763_v13, %s2143_s26 }
 0x4a6   :  { %1286 = vrot.lane.b32.xlu0 %v2763_v13, %s2146_s29  ;;  %1308 = vrot.lane.b32.xlu1 %v2763_v13, %s2145_s28 }
 0x4a7   :  { %v1192_v18 = vld [vmem:[#allocation2 + $0x20] sm:$0xff] }
 0x4aa   :  { %1242 = vrot.lane.b32.xlu0 %v2763_v13, %s2148_s10  ;;  %1264 = vrot.lane.b32.xlu1 %v2763_v13, %s2147_s30 }
 0x4ae   :  { %1360 = vrot.lane.b32.xlu0 %v1192_v18, %s2143_s26  ;;  %1220 = vrot.lane.b32.xlu1 %v2763_v13, %s2149_s11 }
 0x4b2   :  { %1316 = vrot.lane.b32.xlu0 %v1192_v18, %s2145_s28  ;;  %1338 = vrot.lane.b32.xlu1 %v1192_v18, %s2144_s27 }
 0x4b6   :  { %1272 = vrot.lane.b32.xlu0 %v1192_v18, %s2147_s30  ;;  %1294 = vrot.lane.b32.xlu1 %v1192_v18, %s2146_s29 }
 0x4ba   :  { %1228 = vrot.lane.b32.xlu0 %v1192_v18, %s2149_s11  ;;  %1250 = vrot.lane.b32.xlu1 %v1192_v18, %s2148_s10 }
 0x4be   :  { %1354 = vrot.lane.b32.xlu1 %v2787_v20, %s2143_s26  ;;  %1356 = vrot.lane.b32.xlu0 %v2790_v21, %s2143_s26 }
 0x4c2   :  { %1358 = vrot.lane.b32.xlu1 %v2797_v61, %s2143_s26  ;;  %1332 = vrot.lane.b32.xlu0 %v2787_v20, %s2144_s27 }
 0x4c6   :  { %1334 = vrot.lane.b32.xlu1 %v2790_v21, %s2144_s27  ;;  %1336 = vrot.lane.b32.xlu0 %v2797_v61, %s2144_s27 }
 0x4ca   :  { %1310 = vrot.lane.b32.xlu1 %v2787_v20, %s2145_s28  ;;  %1312 = vrot.lane.b32.xlu0 %v2790_v21, %s2145_s28 }
 0x4ce   :  { %1314 = vrot.lane.b32.xlu1 %v2797_v61, %s2145_s28  ;;  %1288 = vrot.lane.b32.xlu0 %v2787_v20, %s2146_s29 }
 0x4d2   :  { %1290 = vrot.lane.b32.xlu1 %v2790_v21, %s2146_s29  ;;  %1292 = vrot.lane.b32.xlu0 %v2797_v61, %s2146_s29 }
 0x4d6   :  { %1266 = vrot.lane.b32.xlu1 %v2787_v20, %s2147_s30  ;;  %1268 = vrot.lane.b32.xlu0 %v2790_v21, %s2147_s30 }
 0x4da   :  { %1270 = vrot.lane.b32.xlu1 %v2797_v61, %s2147_s30  ;;  %1244 = vrot.lane.b32.xlu0 %v2787_v20, %s2148_s10 }
 0x4de   :  { %1246 = vrot.lane.b32.xlu1 %v2790_v21, %s2148_s10  ;;  %1248 = vrot.lane.b32.xlu0 %v2797_v61, %s2148_s10 }
 0x4e2   :  { %1222 = vrot.lane.b32.xlu1 %v2787_v20, %s2149_s11  ;;  %1224 = vrot.lane.b32.xlu0 %v2790_v21, %s2149_s11 }
 0x4e6   :  { %1226 = vrot.lane.b32.xlu1 %v2797_v61, %s2149_s11  ;;  %1200 = vrot.lane.b32.xlu0 %v2787_v20, %s2150_s12 }
 0x4ea   :  { %1202 = vrot.lane.b32.xlu1 %v2790_v21, %s2150_s12  ;;  %1204 = vrot.lane.b32.xlu0 %v2797_v61, %s2150_s12 }
 0x4ee   :  { %1206 = vrot.lane.b32.xlu1 %v1192_v18, %s2150_s12  ;;  %1198 = vrot.lane.b32.xlu0 %v2763_v13, %s2150_s12 }
 0x4f2   :  { %1376 = vperm.xlu1 %2068, %v1158_v9  }
 0x514   :  { %v1331_v23 = vpop.permute.xlu0 %1330  ;;  %v1353_v10 = vpop.permute.xlu1 %1352 }
 0x518   :  { %v1287_v25 = vpop.permute.xlu0 %1286  ;;  %v1309_v62 = vpop.permute.xlu1 %1308 }
 0x51c   :  { %v2849_v11 = vpop.permute.xlu0 %1242  ;;  %v1265_v28 = vpop.permute.xlu1 %1264 }
 0x520   :  { %v1361_v26 = vpop.permute.xlu0 %1360  ;;  %v2851_v63 = vpop.permute.xlu1 %1220 }
 0x524   :  { %v1317_v8 = vpop.permute.xlu0 %1316  ;;  %v1339_v29 = vpop.permute.xlu1 %1338 }
 0x528   :  { %v1273_v30 = vpop.permute.xlu0 %1272  ;;  %v1295_v33 = vpop.permute.xlu1 %1294 }
 0x52c   :  { %v2853_v34 = vpop.permute.xlu0 %1228  ;;  %v1251_v24 = vpop.permute.xlu1 %1250 }
 0x530   :  { %v1357_v42 = vpop.permute.xlu0 %1356  ;;  %v1355_v14 = vpop.permute.xlu1 %1354 }
 0x531   :  { %v1362_v27 = vsel %vm3283_vm10, %v1353_v10, %v1355_v14  ;;  %v1363_v43 = vsel %vm3284_vm4, %v1355_v14, %v1357_v42  ;;  %vm3291_vm10 = vmmov %vm3290_vm2 }
 0x532   :  { %1993 = vmatprep.subr.msk.mxu0 %vm2368_vm7, %v1363_v43  ;;  %vm3292_vm4 = vmmov %vm3290_vm2 }
 0x533   :  { %1994 = vmatpush1.msk.msra.mxu0 %vm3285_vm0, %v1362_v27  ;;  %vm3293_vm0 = vcmp.lt.s32.totalorder %v2342_v37, 256 }
 0x534   :  { %v1333_v45 = vpop.permute.xlu0 %1332  ;;  %v1359_v50 = vpop.permute.xlu1 %1358 }
 0x535   :  { %v1364_v51 = vsel %vm3286_vm12, %v1357_v42, %v1359_v50  ;;  %v1365_v31 = vsel %vm3287_vm5, %v1359_v50, %v1361_v26  ;;  %v1340_v44 = vsel %vm3292_vm4, %v1331_v23, %v1333_v45  ;;  %vm3294_vm12 = vcmp.lt.s32.totalorder %v2350_v41, 256 }
 0x536   :  { %2008 = vmatprep.subr.msk.mxu1 %vm2376_vm9, %v1365_v31  ;;  %vm3295_vm5 = vcmask 785408   ;;  %vm3300_vm4 = vcmp.ge.s32.totalorder %v2406_v2, 0 }
 0x537   :  { %2009 = vmatpush1.msk.msra.mxu1 %vm3288_vm11, %v1364_v51  ;;  %vm3296_vm11 = vmmov %vm3295_vm5 }
 0x538   :  { %v1337_v54 = vpop.permute.xlu0 %1336  ;;  %v1335_v53 = vpop.permute.xlu1 %1334 }
 0x539   :  { %v1343_v32 = vsel %vm3289_vm14, %v1337_v54, %v1339_v29  ;;  %v1341_v55 = vsel %vm3290_vm2, %v1333_v45, %v1335_v53  ;;  %v1342_v59 = vsel %vm3291_vm10, %v1335_v53, %v1337_v54  ;;  %vm3297_vm14 = vcmp.ge.s32.totalorder %v2404_v1, 0  ;;  %vm3298_vm2 = vmmov %vm3295_vm5 }
 0x53a   :  { %1995 = vmatprep.subr.msk.mxu0 %vm3293_vm0, %v1341_v55  ;;  %2010 = vmatprep.subr.msk.mxu1 %vm3294_vm12, %v1343_v32  ;;  %vm3299_vm10 = vmmov %vm3298_vm2  ;;  %vm3301_vm0 = vcmask 900096  }
 0x53b   :  { %1399 = vmatpush1.msra.mxu0 %v1340_v44  ;;  %1470 = vmatpush1.msra.mxu1 %v1342_v59  ;;  %vm3302_vm12 = vmmov %vm3301_vm0 }
 0x53c   :  { %v1313_v35 = vpop.permute.xlu0 %1312  ;;  %v1311_v3 = vpop.permute.xlu1 %1310 }
 0x53d   :  { %v1318_v4 = vsel %vm3295_vm5, %v1309_v62, %v1311_v3  ;;  %v1319_v7 = vsel %vm3296_vm11, %v1311_v3, %v1313_v35  ;;  %vm3303_vm5 = vmmov %vm3301_vm0 }
 0x53e   :  { %1996 = vmatprep.subr.msk.mxu0 %vm2417_vm15, %v1319_v7  ;;  %vm3304_vm11 = vmmov %vm3301_vm0 }
 0x53f   :  { %1997 = vmatpush1.msk.msra.mxu0 %vm3297_vm14, %v1318_v4  ;;  %vm3305_vm14 = vcmp.lt.s32.totalorder %v2340_v36, 16 }
 0x540   :  { %v1289_v60 = vpop.permute.xlu0 %1288  ;;  %v1315_v15 = vpop.permute.xlu1 %1314 }
 0x541   :  { %v1320_v16 = vsel %vm3298_vm2, %v1313_v35, %v1315_v15  ;;  %v1321_v12 = vsel %vm3299_vm10, %v1315_v15, %v1317_v8  ;;  %v1296_v62 = vsel %vm3304_vm11, %v1287_v25, %v1289_v60  ;;  %vm3306_vm2 = vcmp.lt.s32.totalorder %v2348_v40, 16 }
 0x542   :  { %2011 = vmatprep.subr.msk.mxu1 %vm2425_vm8, %v1321_v12  ;;  %vm3307_vm10 = vcmp.lt.s32.totalorder %v2360_v46, 16 }
 0x543   :  { %2012 = vmatpush1.msk.msra.mxu1 %vm3300_vm4, %v1320_v16  ;;  %vm3308_vm4 = vcmp.lt.s32.totalorder %v2362_v47, 16 }
 0x544   :  { %v1293_v18 = vpop.permute.xlu0 %1292  ;;  %v1291_v19 = vpop.permute.xlu1 %1290 }
 0x545   :  { %v1299_v9 = vsel %vm3301_vm0, %v1293_v18, %v1295_v33  ;;  %v1297_v23 = vsel %vm3302_vm12, %v1289_v60, %v1291_v19  ;;  %v1298_v10 = vsel %vm3303_vm5, %v1291_v19, %v1293_v18  ;;  %vm3309_vm0 = vcmask 908288  }
 0x546   :  { %1998 = vmatprep.subr.msk.mxu0 %vm3305_vm14, %v1297_v23  ;;  %2013 = vmatprep.subr.msk.mxu1 %vm3306_vm2, %v1299_v9  ;;  %vm3310_vm12 = vmmov %vm3309_vm0  ;;  %vm3313_vm14 = vcmask 916480  }
 0x547   :  { %1999 = vmatpush1.msk.msra.mxu0 %vm3307_vm10, %v1296_v62  ;;  %2014 = vmatpush1.msk.msra.mxu1 %vm3308_vm4, %v1298_v10  ;;  %vm3311_vm5 = vmmov %vm3309_vm0 }
 0x548   :  { %v1269_v26 = vpop.permute.xlu0 %1268  ;;  %v1267_v8 = vpop.permute.xlu1 %1266  ;;  %vm3312_vm11 = vmmov %vm3309_vm0 }
 0x549   :  { %v1274_v29 = vsel %vm3309_vm0, %v1265_v28, %v1267_v8  ;;  %v1275_v33 = vsel %vm3310_vm12, %v1267_v8, %v1269_v26  ;;  %vm3314_vm2 = vmmov %vm3313_vm14  ;;  %vm3317_vm0 = vcmp.ge.s32.totalorder %v2390_v56, 0  ;;  %vm3318_vm12 = vcmp.ge.s32.totalorder %v2396_v57, 0 }
 0x54a   :  { %1404 = vmatprep.subr.mxu0 %v1275_v33  ;;  %vm3315_vm10 = vmmov %vm3314_vm2 }
 0x54b   :  { %1405 = vmatpush1.msra.mxu0 %v1274_v29  ;;  %vm3316_vm4 = vmmov %vm3314_vm2 }
 0x54c   :  { %v1245_v25 = vpop.permute.xlu0 %1244  ;;  %v1271_v42 = vpop.permute.xlu1 %1270 }
 0x54d   :  { %v1276_v14 = vsel %vm3311_vm5, %v1269_v26, %v1271_v42  ;;  %v1277_v27 = vsel %vm3312_vm11, %v1271_v42, %v1273_v30  ;;  %v1252_v31 = vsel %vm3316_vm4, %v2849_v11, %v1245_v25  ;;  %vm3319_vm5 = vcmp.ge.s32.totalorder %v2404_v1, 0 }
 0x54e   :  { %1475 = vmatprep.subr.mxu1 %v1277_v27  ;;  %vm3320_vm11 = vcmp.ge.s32.totalorder %v2406_v2, 0 }
 0x54f   :  { %1476 = vmatpush1.msra.mxu1 %v1276_v14 }
 0x550   :  { %v1249_v43 = vpop.permute.xlu0 %1248  ;;  %v1247_v45 = vpop.permute.xlu1 %1246 }
 0x551   :  { %v1255_v50 = vsel %vm3313_vm14, %v1249_v43, %v1251_v24  ;;  %v1253_v51 = vsel %vm3314_vm2, %v1245_v25, %v1247_v45  ;;  %v1254_v28 = vsel %vm3315_vm10, %v1247_v45, %v1249_v43  ;;  %vm3321_vm14 = vcmask 1031168  }
 0x552   :  { %2000 = vmatprep.subr.msk.mxu0 %vm3317_vm0, %v1253_v51  ;;  %2015 = vmatprep.subr.msk.mxu1 %vm3318_vm12, %v1255_v50  ;;  %vm3322_vm2 = vmmov %vm3321_vm14  ;;  %vm3323_vm10 = vcmp.lt.s32.totalorder %v2340_v36, 16  ;;  %vm3326_vm12 = vcmp.lt.s32.totalorder %v2348_v40, 16 }
 0x553   :  { %2001 = vmatpush1.msk.msra.mxu0 %vm3319_vm5, %v1252_v31  ;;  %2016 = vmatpush1.msk.msra.mxu1 %vm3320_vm11, %v1254_v28  ;;  %vm3324_vm4 = vmmov %vm3322_vm2  ;;  %vm3327_vm5 = vcmask 1039360   ;;  %v1537_v31 = vld [vmem:[%s3178_s8] sm:$0x7] }
 0x554   :  { %v1225_v30 = vpop.permute.xlu0 %1224  ;;  %v1223_v24 = vpop.permute.xlu1 %1222  ;;  %vm3325_vm0 = vmmov %vm3322_vm2 }
 0x555   :  { %v1230_v54 = vsel %vm3321_vm14, %v2851_v63, %v1223_v24  ;;  %v1231_v53 = vsel %vm3322_vm2, %v1223_v24, %v1225_v30  ;;  %vm3328_vm11 = vmmov %vm3327_vm5 }
 0x556   :  { %2002 = vmatprep.subr.msk.mxu0 %vm3323_vm10, %v1231_v53  ;;  %vm3329_vm14 = vmmov %vm3327_vm5  ;;  %vm3331_vm10 = vcmp.ge.s32.totalorder %v2467_v22, 0 }
 0x557   :  { %2003 = vmatpush1.msk.msra.mxu0 %vm2491_vm13, %v1230_v54  ;;  %vm3330_vm2 = vmmov %vm3327_vm5 }
 0x558   :  { %v1201_v11 = vpop.permute.xlu0 %1200  ;;  %v1227_v32 = vpop.permute.xlu1 %1226 }
 0x559   :  { %v1232_v55 = vsel %vm3324_vm4, %v1225_v30, %v1227_v32  ;;  %v1233_v59 = vsel %vm3325_vm0, %v1227_v32, %v2853_v34  ;;  %v1157_v34 = vld [vmem:[%s3175_s5] sm:$0xff]  ;;  %vm3332_vm4 = vcmp.ge.s32.totalorder %v2390_v56, 0  ;;  %vm3333_vm0 = vcmp.ge.s32.totalorder %v2472_v52, 0 }
 0x55a   :  { %2017 = vmatprep.subr.msk.mxu1 %vm3326_vm12, %v1233_v59  ;;  %vm3334_vm12 = vcmp.ge.s32.totalorder %v2396_v57, 0 }
 0x55b   :  { %2018 = vmatpush1.msk.msra.mxu1 %vm2499_vm6, %v1232_v55 }
 0x55c   :  { %v1205_v63 = vpop.permute.xlu0 %1204  ;;  %v1203_v44 = vpop.permute.xlu1 %1202 }
 0x55d   :  { %v1209_v35 = vsel %vm3327_vm5, %v1201_v11, %v1203_v44  ;;  %v1210_v15 = vsel %vm3330_vm2, %v1203_v44, %v1205_v63  ;;  %vm3335_vm5 = vcmask 588800  }
 0x55e   :  { %1410 = vmatprep.subr.mxu0 %v1209_v35 }
 0x560   :  { %v1199_v3 = vpop.permute.xlu0 %1198  ;;  %v1207_v4 = vpop.permute.xlu1 %1206 }
 0x561   :  { %v1208_v7 = vsel %vm3328_vm11, %v1199_v3, %v1201_v11  ;;  %v1211_v60 = vsel %vm3329_vm14, %v1205_v63, %v1207_v4  ;;  %vm3336_vm11 = vmmov %vm3335_vm5 }
 0x562   :  { %2004 = vmatpush1.msk.msra.mxu0 %vm3331_vm10, %v1208_v7  ;;  %1481 = vmatprep.subr.mxu1 %v1211_v60 }
 0x563   :  { %2005 = vmatprep.subr.msk.mxu0 %vm3332_vm4, %v2787_v20  ;;  %2019 = vmatpush1.msk.msra.mxu1 %vm3333_vm0, %v1210_v15  ;;  %vm3337_vm0 = vcmask 1047688  }
 0x564   :  { %2006 = vmatpush1.msk.msra.mxu0 %vm2541_vm3, %v2763_v13  ;;  %2020 = vmatprep.subr.msk.mxu1 %vm3334_vm12, %v2797_v61  ;;  %vm3338_vm12 = vcmask 138240  }
 0x565   :  { %2007 = vmatmul.mubr.msk.f32.vlgmr.msra.gmra.mxu0 %vm3335_vm5, %v1157_v34  ;;  %2021 = vmatpush1.msk.msra.mxu1 %vm2524_vm1, %v2790_v21  ;;  %vm3339_vm5 = vmmov %vm3338_vm12 }
 0x566   :  { %2022 = vmatmul.mubr.msk.f32.vlgmr.msra.gmra.mxu1 %vm3336_vm11, %v1157_v34  ;;  %1825 = vmatprep.mubr.f32.mxu0 %v2141_v0  ;;  %vm3340_vm11 = vmmov %vm3339_vm5 }
 0x567   :  { %1896 = vmatprep.mubr.f32.mxu1 %v2141_v0 }
 0x56d   :  { %v1377_v20 = vpop.permute.xlu1 %1376 }
 0x625   :  { %v1448_v16 = vpop.f32.mrf.mxu0 }
 0x626   :  { %v1449_v12 = vadd.f32 %v1448_v16, %v1377_v20  ;;  %v1519_v13 = vpop.f32.mrf.mxu1 }
 0x627   :  { %v1520_v18 = vadd.f32 %v1519_v13, %v1377_v20  ;;  %v1450_v19 = vpop.f32.mrf.mxu0 }
 0x628   :  { %v1451_v9 = vadd.f32 %v1450_v19, %v1377_v20  ;;  %v1521_v61 = vpop.f32.mrf.mxu1  ;;  %vm1524_vm14 = vcmp.ge.f32.partialorder %v1449_v12, 0.0  ;;  %v1528_v23 = vmul.f32 0.01, %v1449_v12 }
 0x629   :  { %v1522_v10 = vadd.f32 %v1521_v61, %v1377_v20  ;;  %v1530_v62 = vmul.f32 0.01, %v1520_v18  ;;  %vm1526_vm10 = vcmp.ge.f32.partialorder %v1520_v18, 0.0 }
 0x62a   :  { %vm1525_vm2 = vcmp.ge.f32.partialorder %v1451_v9, 0.0  ;;  %v1529_v21 = vmul.f32 0.01, %v1451_v9  ;;  %v1532_v26 = vsel %vm1524_vm14, %v1449_v12, %v1528_v23  ;;  %vm3341_vm14 = vmmov %vm3339_vm5 }
 0x62b   :  { %1542 = vrot.lane.b32.xlu0 %v1532_v26, %s2142_s21  ;;  %v1531_v8 = vmul.f32 0.01, %v1522_v10  ;;  %vm1527_vm4 = vcmp.ge.f32.partialorder %v1522_v10, 0.0  ;;  %v1534_v29 = vsel %vm1526_vm10, %v1520_v18, %v1530_v62 }
 0x62c   :  { %v1533_v0 = vsel %vm1525_vm2, %v1451_v9, %v1529_v21  ;;  %vm3342_vm2 = vcmask 769024  }
 0x62d   :  { %1544 = vrot.lane.b32.xlu1 %v1533_v0, %s2142_s21  ;;  %v1535_v33 = vsel %vm1527_vm4, %v1522_v10, %v1531_v8  ;;  %vm3343_vm10 = vmmov %vm3342_vm2  ;;  %vm3344_vm4 = vcmp.lt.s32.totalorder %v2360_v46, 16 }
 0x62f   :  { %1546 = vrot.lane.b32.xlu0 %v1534_v29, %s2142_s21 }
 0x631   :  { %1548 = vrot.lane.b32.xlu1 %v1535_v33, %s2142_s21  ;;  %s2152_s21 = smov [#allocation8]  }
 0x632   :  { %s1923_s22 = sshll.u32 %s2152_s21, 4  ;;  %s1924_s22 = int_to_ptr.vmem [resolvable:$true] %s1923_s22 }
 0x633   :  { %p2118_p11 = scmp.lt.s32.totalorder %s1924_s22, %s1924_s22 }
 0x69d   :  { %v1543_v25 = vpop.permute.xlu0 %1542 }
 0x69e   :  { %1558 = vst.msk [vmem:[#allocation2] sm:$0xff] %vm3337_vm0, %v1543_v25  ;;  %vm3345_vm0 = vmmov %vm3342_vm2 }
 0x69f   :  { %v1545_v42 = vpop.permute.xlu1 %1544 }
 0x6a0   :  { %v2963_v14 = vsel %vm3338_vm12, %v1543_v25, %v1545_v42  ;;  %vm3346_vm12 = vmmov %vm3345_vm0 }
 0x6a1   :  { %v1547_v27 = vpop.permute.xlu0 %1546 }
 0x6a2   :  { %v2966_v43 = vsel %vm3339_vm5, %v1545_v42, %v1547_v27  ;;  %vm3347_vm5 = vcmp.lt.s32.totalorder %v2362_v47, 16 }
 0x6a3   :  { %v1549_v45 = vpop.permute.xlu1 %1548 }
 0x6a4   :  { %v2969_v50 = vsel %vm3340_vm11, %v1547_v27, %v1549_v45  ;;  %1562 = vst.msk [vmem:[#allocation2 + $0x20] sm:$0xff] %vm3341_vm14, %v1549_v45  ;;  %vm3348_vm11 = vcmask 777216  }
 0x6a5   :  { %v2972_v51 = vld [vmem:[#allocation2] sm:$0xff] }
 0x6a6   :  { %1709 = vrot.lane.b32.xlu1 %v2972_v51, %s2144_s27  ;;  %1731 = vrot.lane.b32.xlu0 %v2972_v51, %s2143_s26 }
 0x6aa   :  { %1665 = vrot.lane.b32.xlu1 %v2972_v51, %s2146_s29  ;;  %1687 = vrot.lane.b32.xlu0 %v2972_v51, %s2145_s28 }
 0x6ab   :  { %v1571_v28 = vld [vmem:[#allocation2 + $0x20] sm:$0xff] }
 0x6ae   :  { %1621 = vrot.lane.b32.xlu1 %v2972_v51, %s2148_s10  ;;  %1643 = vrot.lane.b32.xlu0 %v2972_v51, %s2147_s30 }
 0x6b2   :  { %1739 = vrot.lane.b32.xlu1 %v1571_v28, %s2143_s26  ;;  %1599 = vrot.lane.b32.xlu0 %v2972_v51, %s2149_s11 }
 0x6b6   :  { %1695 = vrot.lane.b32.xlu1 %v1571_v28, %s2145_s28  ;;  %1717 = vrot.lane.b32.xlu0 %v1571_v28, %s2144_s27 }
 0x6ba   :  { %1651 = vrot.lane.b32.xlu1 %v1571_v28, %s2147_s30  ;;  %1673 = vrot.lane.b32.xlu0 %v1571_v28, %s2146_s29 }
 0x6be   :  { %1607 = vrot.lane.b32.xlu1 %v1571_v28, %s2149_s11  ;;  %1629 = vrot.lane.b32.xlu0 %v1571_v28, %s2148_s10 }
 0x6c2   :  { %1733 = vrot.lane.b32.xlu0 %v2963_v14, %s2143_s26  ;;  %1735 = vrot.lane.b32.xlu1 %v2966_v43, %s2143_s26 }
 0x6c6   :  { %1737 = vrot.lane.b32.xlu0 %v2969_v50, %s2143_s26  ;;  %1711 = vrot.lane.b32.xlu1 %v2963_v14, %s2144_s27 }
 0x6ca   :  { %1713 = vrot.lane.b32.xlu0 %v2966_v43, %s2144_s27  ;;  %1715 = vrot.lane.b32.xlu1 %v2969_v50, %s2144_s27  ;;  %s2113_s27 = scalar_lea.vmem %s1924_s22, 256 }
 0x6cb   :  { %p2114_p10 = scmp.ne.s32.totalorder %s1924_s22, %s2113_s27  ;;  %p2119_p12 = scmp.lt.s32.totalorder %s2113_s27, %s2113_s27 }
 0x6cd   :  { %p2120_p13 = por %p2119_p12, %p2118_p11 }
 0x6ce   :  { %1689 = vrot.lane.b32.xlu0 %v2963_v14, %s2145_s28  ;;  %1691 = vrot.lane.b32.xlu1 %v2966_v43, %s2145_s28 }
 0x6cf   :  { %p2121_p0 = pnand %p2120_p13, %p2114_p10 }
 0x6d2   :  { %1693 = vrot.lane.b32.xlu0 %v2969_v50, %s2145_s28  ;;  %1667 = vrot.lane.b32.xlu1 %v2963_v14, %s2146_s29 }
 0x6d6   :  { %1669 = vrot.lane.b32.xlu0 %v2966_v43, %s2146_s29  ;;  %1671 = vrot.lane.b32.xlu1 %v2969_v50, %s2146_s29 }
 0x6da   :  { %1645 = vrot.lane.b32.xlu0 %v2963_v14, %s2147_s30  ;;  %1647 = vrot.lane.b32.xlu1 %v2966_v43, %s2147_s30 }
 0x6de   :  { %1649 = vrot.lane.b32.xlu0 %v2969_v50, %s2147_s30  ;;  %1623 = vrot.lane.b32.xlu1 %v2963_v14, %s2148_s10 }
 0x6e2   :  { %1625 = vrot.lane.b32.xlu0 %v2966_v43, %s2148_s10  ;;  %1627 = vrot.lane.b32.xlu1 %v2969_v50, %s2148_s10 }
 0x6e6   :  { %1601 = vrot.lane.b32.xlu0 %v2963_v14, %s2149_s11  ;;  %1603 = vrot.lane.b32.xlu1 %v2966_v43, %s2149_s11 }
 0x6ea   :  { %1605 = vrot.lane.b32.xlu0 %v2969_v50, %s2149_s11  ;;  %1579 = vrot.lane.b32.xlu1 %v2963_v14, %s2150_s12 }
 0x6ee   :  { %1581 = vrot.lane.b32.xlu0 %v2966_v43, %s2150_s12  ;;  %1583 = vrot.lane.b32.xlu1 %v2969_v50, %s2150_s12 }
 0x6f2   :  { %1585 = vrot.lane.b32.xlu0 %v1571_v28, %s2150_s12  ;;  %1577 = vrot.lane.b32.xlu1 %v2972_v51, %s2150_s12 }
 0x6f6   :  { %1755 = vperm.xlu0 %2067, %v1537_v31  }
 0x718   :  { %v1710_v30 = vpop.permute.xlu1 %1709  ;;  %v1732_v24 = vpop.permute.xlu0 %1731 }
 0x71c   :  { %v1666_v54 = vpop.permute.xlu1 %1665  ;;  %v1688_v53 = vpop.permute.xlu0 %1687 }
 0x720   :  { %v3049_v11 = vpop.permute.xlu1 %1621  ;;  %v1644_v32 = vpop.permute.xlu0 %1643 }
 0x724   :  { %v1740_v55 = vpop.permute.xlu1 %1739  ;;  %v3051_v59 = vpop.permute.xlu0 %1599 }
 0x728   :  { %v1696_v63 = vpop.permute.xlu1 %1695  ;;  %v1718_v44 = vpop.permute.xlu0 %1717 }
 0x72c   :  { %v1652_v35 = vpop.permute.xlu1 %1651  ;;  %v1674_v3 = vpop.permute.xlu0 %1673 }
 0x730   :  { %v3053_v4 = vpop.permute.xlu1 %1607  ;;  %v1630_v7 = vpop.permute.xlu0 %1629 }
 0x734   :  { %v1736_v60 = vpop.permute.xlu1 %1735  ;;  %v1734_v15 = vpop.permute.xlu0 %1733 }
 0x735   :  { %v1741_v34 = vsel %vm3342_vm2, %v1732_v24, %v1734_v15  ;;  %v1742_v20 = vsel %vm3343_vm10, %v1734_v15, %v1736_v60  ;;  %vm3352_vm10 = vcmp.lt.s32.totalorder %v2342_v37, 256 }
 0x736   :  { %2023 = vmatprep.subr.msk.mxu0 %vm2368_vm7, %v1742_v20  ;;  %vm3349_vm7 = vmmov %vm3348_vm11 }
 0x737   :  { %2024 = vmatpush1.msk.msra.mxu0 %vm3344_vm4, %v1741_v34  ;;  %vm3350_vm14 = vmmov %vm3349_vm7  ;;  %vm3353_vm4 = vcmp.lt.s32.totalorder %v2350_v41, 256 }
 0x738   :  { %v1712_v16 = vpop.permute.xlu1 %1711  ;;  %v1738_v12 = vpop.permute.xlu0 %1737  ;;  %vm3351_vm2 = vmmov %vm3349_vm7 }
 0x739   :  { %v1743_v13 = vsel %vm3345_vm0, %v1736_v60, %v1738_v12  ;;  %v1744_v18 = vsel %vm3346_vm12, %v1738_v12, %v1740_v55  ;;  %v1719_v10 = vsel %vm3351_vm2, %v1710_v30, %v1712_v16  ;;  %vm3356_vm12 = vcmp.ge.s32.totalorder %v2404_v1, 0 }
 0x73a   :  { %2038 = vmatprep.subr.msk.mxu1 %vm2376_vm9, %v1744_v18  ;;  %vm3354_vm9 = vcmask 785408  }
 0x73b   :  { %2039 = vmatpush1.msk.msra.mxu1 %vm3347_vm5, %v1743_v13  ;;  %vm3355_vm0 = vmmov %vm3354_vm9 }
 0x73c   :  { %v1716_v19 = vpop.permute.xlu1 %1715  ;;  %v1714_v9 = vpop.permute.xlu0 %1713  ;;  %vm3357_vm5 = vmmov %vm3355_vm0 }
 0x73d   :  { %v1722_v48 = vsel %vm3348_vm11, %v1716_v19, %v1718_v44  ;;  %v1720_v61 = vsel %vm3349_vm7, %v1712_v16, %v1714_v9  ;;  %v1721_v23 = vsel %vm3350_vm14, %v1714_v9, %v1716_v19  ;;  %vm3358_vm11 = vmmov %vm3355_vm0  ;;  %vm3359_vm7 = vcmp.ge.s32.totalorder %v2406_v2, 0  ;;  %v2071_v19 = vld [vmem:[%s3170_s0 + $0x10] sm:$0xff] }
 0x73e   :  { %2025 = vmatprep.subr.msk.mxu0 %vm3352_vm10, %v1720_v61  ;;  %2040 = vmatprep.subr.msk.mxu1 %vm3353_vm4, %v1722_v48  ;;  %vm3360_vm14 = vcmask 900096   ;;  %vm3364_vm4 = vcmp.lt.s32.totalorder %v2340_v36, 16  ;;  %v2072_v48 = vld [vmem:[%s3170_s0 + $0x18] sm:$0xff] }
 0x73f   :  { %1778 = vmatpush1.msra.mxu0 %v1719_v10  ;;  %1849 = vmatpush1.msra.mxu1 %v1721_v23  ;;  %vm3362_vm2 = vmmov %vm3360_vm14 }
 0x740   :  { %v1692_v49 = vpop.permute.xlu1 %1691  ;;  %v1690_v62 = vpop.permute.xlu0 %1689  ;;  %vm3363_vm10 = vmmov %vm3362_vm2 }
 0x741   :  { %v1697_v21 = vsel %vm3354_vm9, %v1688_v53, %v1690_v62  ;;  %v1698_v26 = vsel %vm3355_vm0, %v1690_v62, %v1692_v49  ;;  %vm3365_vm9 = vcmp.lt.s32.totalorder %v2348_v40, 16  ;;  %vm3367_vm0 = vcmp.lt.s32.totalorder %v2362_v47, 16 }
 0x742   :  { %2026 = vmatprep.subr.msk.mxu0 %vm2417_vm15, %v1698_v26  ;;  %vm3361_vm15 = vmmov %vm3360_vm14 }
 0x743   :  { %2027 = vmatpush1.msk.msra.mxu0 %vm3356_vm12, %v1697_v21  ;;  %vm3368_vm12 = vcmask 908288  }
 0x744   :  { %v1668_v8 = vpop.permute.xlu1 %1667  ;;  %v1694_v37 = vpop.permute.xlu0 %1693 }
 0x745   :  { %v1699_v0 = vsel %vm3357_vm5, %v1692_v49, %v1694_v37  ;;  %v1700_v41 = vsel %vm3358_vm11, %v1694_v37, %v1696_v63  ;;  %v1675_v27 = vsel %vm3363_vm10, %v1666_v54, %v1668_v8  ;;  %vm3369_vm5 = vmmov %vm3368_vm12 }
 0x746   :  { %2041 = vmatprep.subr.msk.mxu1 %vm2425_vm8, %v1700_v41  ;;  %vm3366_vm8 = vcmp.lt.s32.totalorder %v2360_v46, 16  ;;  %vm3370_vm11 = vmmov %vm3369_vm5 }
 0x747   :  { %2042 = vmatpush1.msk.msra.mxu1 %vm3359_vm7, %v1699_v0  ;;  %vm3371_vm7 = vmmov %vm3369_vm5 }
 0x748   :  { %v1672_v29 = vpop.permute.xlu1 %1671  ;;  %v1670_v33 = vpop.permute.xlu0 %1669 }
 0x749   :  { %v1678_v5 = vsel %vm3360_vm14, %v1672_v29, %v1674_v3  ;;  %v1676_v25 = vsel %vm3361_vm15, %v1668_v8, %v1670_v33  ;;  %v1677_v42 = vsel %vm3362_vm2, %v1670_v33, %v1672_v29  ;;  %vm3372_vm14 = vcmask 916480  }
 0x74a   :  { %2028 = vmatprep.subr.msk.mxu0 %vm3364_vm4, %v1676_v25  ;;  %2043 = vmatprep.subr.msk.mxu1 %vm3365_vm9, %v1678_v5  ;;  %vm3373_vm15 = vmmov %vm3372_vm14  ;;  %vm3376_vm4 = vcmp.ge.s32.totalorder %v2390_v56, 0  ;;  %vm3377_vm9 = vcmp.ge.s32.totalorder %v2396_v57, 0 }
 0x74b   :  { %2029 = vmatpush1.msk.msra.mxu0 %vm3366_vm8, %v1675_v27  ;;  %2044 = vmatpush1.msk.msra.mxu1 %vm3367_vm0, %v1677_v42  ;;  %vm3374_vm2 = vmmov %vm3372_vm14  ;;  %vm3378_vm8 = vcmp.ge.s32.totalorder %v2404_v1, 0  ;;  %vm3379_vm0 = vcmp.ge.s32.totalorder %v2406_v2, 0 }
 0x74c   :  { %v1648_v6 = vpop.permute.xlu1 %1647  ;;  %v1646_v45 = vpop.permute.xlu0 %1645  ;;  %vm3375_vm10 = vmmov %vm3374_vm2 }
 0x74d   :  { %v1653_v28 = vsel %vm3368_vm12, %v1644_v32, %v1646_v45  ;;  %v1654_v31 = vsel %vm3369_vm5, %v1646_v45, %v1648_v6  ;;  %vm3380_vm12 = vcmask 1031168  }
 0x74e   :  { %1783 = vmatprep.subr.mxu0 %v1654_v31  ;;  %vm3381_vm5 = vmmov %vm3380_vm12 }
 0x74f   :  { %1784 = vmatpush1.msra.mxu0 %v1653_v28 }
 0x750   :  { %v1624_v30 = vpop.permute.xlu1 %1623  ;;  %v1650_v24 = vpop.permute.xlu0 %1649 }
 0x751   :  { %v1655_v54 = vsel %vm3370_vm11, %v1648_v6, %v1650_v24  ;;  %v1656_v53 = vsel %vm3371_vm7, %v1650_v24, %v1652_v35  ;;  %v1631_v44 = vsel %vm3375_vm10, %v3049_v11, %v1624_v30  ;;  %vm3382_vm11 = vcmp.lt.s32.totalorder %v2340_v36, 16  ;;  %vm3383_vm7 = vmmov %vm3381_vm5 }
 0x752   :  { %1854 = vmatprep.subr.mxu1 %v1656_v53 }
 0x753   :  { %1855 = vmatpush1.msra.mxu1 %v1655_v54 }
 0x754   :  { %v1628_v46 = vpop.permute.xlu1 %1627  ;;  %v1626_v55 = vpop.permute.xlu0 %1625 }
 0x755   :  { %v1634_v47 = vsel %vm3372_vm14, %v1628_v46, %v1630_v7  ;;  %v1632_v63 = vsel %vm3373_vm15, %v1624_v30, %v1626_v55  ;;  %v1633_v32 = vsel %vm3374_vm2, %v1626_v55, %v1628_v46  ;;  %vm3384_vm14 = vmmov %vm3381_vm5  ;;  %vm3385_vm15 = vcmp.lt.s32.totalorder %v2348_v40, 16  ;;  %v1536_v40 = vld [vmem:[%s3177_s7] sm:$0x7] }
 0x756   :  { %2030 = vmatprep.subr.msk.mxu0 %vm3376_vm4, %v1632_v63  ;;  %2045 = vmatprep.subr.msk.mxu1 %vm3377_vm9, %v1634_v47  ;;  %vm3386_vm2 = vcmask 1039360   ;;  %vm3390_vm9 = vcmp.ge.s32.totalorder %v2467_v22, 0 }
 0x757   :  { %2031 = vmatpush1.msk.msra.mxu0 %vm3378_vm8, %v1631_v44  ;;  %2046 = vmatpush1.msk.msra.mxu1 %vm3379_vm0, %v1633_v32  ;;  %vm3388_vm10 = vmmov %vm3386_vm2  ;;  %vm3392_vm8 = vcmp.ge.s32.totalorder %v2472_v52, 0  ;;  %vm3393_vm0 = vcmp.ge.s32.totalorder %v2396_v57, 0  ;;  %v2069_v57 = vld [vmem:[%s3170_s0] sm:$0xff] }
 0x758   :  { %v1604_v35 = vpop.permute.xlu1 %1603  ;;  %v1602_v3 = vpop.permute.xlu0 %1601  ;;  %vm3389_vm4 = vmmov %vm3386_vm2 }
 0x759   :  { %v1609_v7 = vsel %vm3380_vm12, %v3051_v59, %v1602_v3  ;;  %v1610_v60 = vsel %vm3381_vm5, %v1602_v3, %v1604_v35  ;;  %vm3394_vm12 = vcmask 588800  }
 0x75a   :  { %2032 = vmatprep.subr.msk.mxu0 %vm3382_vm11, %v1610_v60  ;;  %vm3395_vm5 = vmmov %vm3394_vm12 }
 0x75b   :  { %2033 = vmatpush1.msk.msra.mxu0 %vm2491_vm13, %v1609_v7  ;;  %vm3387_vm13 = vmmov %vm3386_vm2 }
 0x75c   :  { %v1580_v11 = vpop.permute.xlu1 %1579  ;;  %v1606_v15 = vpop.permute.xlu0 %1605 }
 0x75d   :  { %v1611_v1 = vsel %vm3383_vm7, %v1604_v35, %v1606_v15  ;;  %v1612_v2 = vsel %vm3384_vm14, %v1606_v15, %v3053_v4 }
 0x75e   :  { %2047 = vmatprep.subr.msk.mxu1 %vm3385_vm15, %v1612_v2 }
 0x75f   :  { %2048 = vmatpush1.msk.msra.mxu1 %vm2499_vm6, %v1611_v1  ;;  %vm3391_vm6 = vcmp.ge.s32.totalorder %v2390_v56, 0 }
 0x760   :  { %v1584_v59 = vpop.permute.xlu1 %1583  ;;  %v1582_v34 = vpop.permute.xlu0 %1581 }
 0x761   :  { %v1588_v36 = vsel %vm3386_vm2, %v1580_v11, %v1582_v34  ;;  %v1589_v13 = vsel %vm3389_vm4, %v1582_v34, %v1584_v59 }
 0x762   :  { %1789 = vmatprep.subr.mxu0 %v1588_v36 }
 0x764   :  { %v1578_v38 = vpop.permute.xlu1 %1577  ;;  %v1586_v20 = vpop.permute.xlu0 %1585 }
 0x765   :  { %v1587_v16 = vsel %vm3387_vm13, %v1578_v38, %v1580_v11  ;;  %v1590_v12 = vsel %vm3388_vm10, %v1584_v59, %v1586_v20 }
 0x766   :  { %2034 = vmatpush1.msk.msra.mxu0 %vm3390_vm9, %v1587_v16  ;;  %1860 = vmatprep.subr.mxu1 %v1590_v12 }
 0x767   :  { %2035 = vmatprep.subr.msk.mxu0 %vm3391_vm6, %v2963_v14  ;;  %2049 = vmatpush1.msk.msra.mxu1 %vm3392_vm8, %v1589_v13 }
 0x768   :  { %2036 = vmatpush1.msk.msra.mxu0 %vm2541_vm3, %v2972_v51  ;;  %2050 = vmatprep.subr.msk.mxu1 %vm3393_vm0, %v2969_v50 }
 0x769   :  { %2037 = vmatmul.mubr.msk.f32.vlgmr.msra.gmra.mxu0 %vm3394_vm12, %v1536_v40  ;;  %2051 = vmatpush1.msk.msra.mxu1 %vm2524_vm1, %v2966_v43 }
 0x76a   :  { %2052 = vmatmul.mubr.msk.f32.vlgmr.msra.gmra.mxu1 %vm3395_vm5, %v1536_v40 }
 0x771   :  { %v1756_v56 = vpop.permute.xlu0 %1755 }
 0x829   :  { %v1827_v22 = vpop.f32.mrf.mxu0 }
 0x82a   :  { %v1828_v52 = vadd.f32 %v1827_v22, %v1756_v56  ;;  %v1898_v58 = vpop.f32.mrf.mxu1 }
 0x82b   :  { %v1899_v14 = vadd.f32 %v1898_v58, %v1756_v56  ;;  %v1829_v4 = vpop.f32.mrf.mxu0 }
 0x82c   :  { %v1830_v17 = vadd.f32 %v1829_v4, %v1756_v56  ;;  %v1900_v51 = vpop.f32.mrf.mxu1  ;;  %v1903_v50 = vadd.f32 %v2069_v57, %v1828_v52 }
 0x82d   :  { %v1901_v18 = vadd.f32 %v1900_v51, %v1756_v56  ;;  %v1905_v9 = vadd.f32 %v2071_v19, %v1899_v14 }
 0x82e   :  { %v1904_v43 = vadd.f32 %v2070_v39, %v1830_v17 }
 0x82f   :  { %v1906_v61 = vadd.f32 %v2072_v48, %v1901_v18 }
 0x830   :  { %v1911_v23 = vcombine.low %v1903_v50, %v1904_v43 }
 0x831   :  { %v1912_v10 = vcombine.low %v1905_v9, %v1906_v61 }
 0x832   :  { %1915 = vst [vmem:[#allocation8] sm:$0x77] %v1911_v23 }
 0x833   :  { %1916 = vst [vmem:[#allocation8 + $0x8] sm:$0x77] %v1912_v10 }
 0x834   :  { %2124 = shalt.err (!%p2121_p0)
}
 0x835   :  { %1926 = dma.vmem_to_hbm [thread:$0]  %s1924_s22, 256, %s3179_s9, [#allocation5]  }
 0x836   :  { %2137 = dma.done.wait [#allocation5], 256  }
 0x837   :  { %2138 = vsyncadd [#allocation5], 4294967040 }
 0x838   :  { %1930 = vsyncpa [#allocation4], 1 }
 0x839   :  { %1931 = vsyncpa [#allocation7], 1 }
 0x83a   :  { %1932 = vsyncpa [#allocation5], 1 }

</bundles_post_ra>
